<compile_context>
chip_gen: v7x
topology: tpu7x:2x2x1
jax: 0.10.0
libtpu: 0.0.40
codegen_flags: <defaults>
</compile_context>

<pallas_src>
import functools

import jax
import jax.numpy as jnp
from jax.experimental import pallas as pl
from jax.experimental.pallas import tpu as pltpu

LANE = 128
OFFSET = 8          # 8-aligned row offset of real data inside padded VMEM bufs


def _round_up(x, m):
    return (x + m - 1) // m * m


# ----------------------------------------------------------------------------
# Fused Pallas kernel: 3 conv blocks + avg-pool + linear classifier
# ----------------------------------------------------------------------------
def fcn_kernel(x_ref, w1_ref, s1_ref, w2_ref, s2_ref, w3_ref, s3_ref,
               fcw_ref, fcb_ref, o_ref, buf_a, buf_b, *, ks, seq_len, cp):
    nb = x_ref.shape[0]
    L = seq_len

    # Zero once per grid step: pad rows around the data emulate 'same' padding.
    buf_a[...] = jnp.zeros_like(buf_a)
    buf_b[...] = jnp.zeros_like(buf_b)
    buf_a[:, OFFSET:OFFSET + L, :] = x_ref[...]

    def conv_block(buf_in, buf_out, w_ref, s_ref, k):
        pad_left = (k - 1) // 2
        start = OFFSET - pad_left
        # im2col: K shifted views concatenated on the lane axis -> one long
        # matmul instead of K short, drain-dominated ones.
        cols = [buf_in[:, start + t:start + t + L, :] for t in range(k)]
        xcol = jnp.concatenate(cols, axis=-1).reshape(nb * L, k * cp)
        acc = jnp.dot(xcol, w_ref[...], preferred_element_type=jnp.float32)
        y = jnp.maximum(acc + s_ref[...], 0.0)      # folded-BN shift + ReLU
        buf_out[:, OFFSET:OFFSET + L, :] = (
            y.reshape(nb, L, cp).astype(buf_out.dtype))

    conv_block(buf_a, buf_b, w1_ref, s1_ref, ks[0])
    conv_block(buf_b, buf_a, w2_ref, s2_ref, ks[1])
    conv_block(buf_a, buf_b, w3_ref, s3_ref, ks[2])

    # AdaptiveAvgPool1d(1) over L + Linear classifier (Dropout = identity).
    feats = buf_b[:, OFFSET:OFFSET + L, :].astype(jnp.float32)   # (nb, L, cp)
    pooled = jnp.mean(feats, axis=1)                             # (nb, cp)
    logits = jnp.dot(pooled.astype(jnp.bfloat16), fcw_ref[...],
                     preferred_element_type=jnp.float32) + fcb_ref[...]
    o_ref[...] = logits.astype(o_ref.dtype)


# ----------------------------------------------------------------------------
# Wrapper
# ----------------------------------------------------------------------------
def fcn_forward(prep, x_ncl):
    """x_ncl: (N, C_in, L), PyTorch NCL layout. Returns logits like FCN.forward."""
    n, c_in, L = x_ncl.shape
    cp, op, ks = prep['cp'], prep['op'], prep['ks']
    assert max((k - 1) // 2 for k in ks) <= OFFSET

    # Channels-last, lane-dense (channels padded to 128), bf16 matmul operands.
    x_nlc = jnp.transpose(x_ncl, (0, 2, 1)).astype(jnp.bfloat16)
    x_p = jnp.pad(x_nlc, ((0, 0), (0, 0), (0, cp - c_in)))

    nb = min(n, 8)                                  # batch tile
    n_pad = _round_up(n, nb)
    if n_pad != n:
        x_p = jnp.pad(x_p, ((0, n_pad - n), (0, 0), (0, 0)))
    grid = (n_pad // nb,)

    max_pad_right = max((k - 1) - (k - 1) // 2 for k in ks)
    lpad = _round_up(OFFSET + L + max_pad_right, 8)

    (w1, s1), (w2, s2), (w3, s3) = [
        (b['w_col'], b['shift']) for b in prep['blocks']]

    def w_spec(shape):
        return pl.BlockSpec(shape, lambda i: (0, 0))

    kern = functools.partial(fcn_kernel, ks=ks, seq_len=L, cp=cp)

    out = pl.pallas_call(
        kern,
        out_shape=jax.ShapeDtypeStruct((n_pad, op), jnp.float32),
        grid_spec=pltpu.PrefetchScalarGridSpec(
            num_scalar_prefetch=0,
            grid=grid,
            in_specs=[
                pl.BlockSpec((nb, L, cp), lambda i: (i, 0, 0)),
                w_spec(w1.shape), w_spec(s1.shape),
                w_spec(w2.shape), w_spec(s2.shape),
                w_spec(w3.shape), w_spec(s3.shape),
                w_spec(prep['fc_w'].shape), w_spec(prep['fc_b'].shape),
            ],
            out_specs=pl.BlockSpec((nb, op), lambda i: (i, 0)),
            scratch_shapes=[
                pltpu.VMEM((nb, lpad, cp), jnp.bfloat16),
                pltpu.VMEM((nb, lpad, cp), jnp.bfloat16),
            ],
        ),
        compiler_params=pltpu.CompilerParams(
            dimension_semantics=("parallel",)),
    )(x_p, w1, s1, w2, s2, w3, s3, prep['fc_w'], prep['fc_b'])

    logits = out[:n, :prep['output_dim']]
    # PyTorch .squeeze(): also drops the batch dim when N == 1 (documented).
    return jnp.squeeze(logits)


# ----------------------------------------------------------------------------
# Parameters: raw (PyTorch-like) init + kernel-layout preparation
# ----------------------------------------------------------------------------
def init_params(key, input_dim, hidden_dim, output_dim):
    ks = (8, 5, 3)
    chans = [(input_dim, hidden_dim),
             (hidden_dim, hidden_dim * 2),
             (hidden_dim * 2, hidden_dim)]
    keys = jax.random.split(key, 3 * 4 + 2)
    ki = 0
    blocks = []
    for (cin, cout), k in zip(chans, ks):
        w = 0.1 * jax.random.normal(keys[ki], (k, cin, cout), jnp.float32); ki += 1
        b = 0.1 * jax.random.normal(keys[ki], (cout,), jnp.float32); ki += 1
        gamma = 1.0 + 0.05 * jax.random.normal(keys[ki], (cout,), jnp.float32); ki += 1
        beta = 0.05 * jax.random.normal(keys[ki], (cout,), jnp.float32); ki += 1
        blocks.append(dict(w=w, b=b, gamma=gamma, beta=beta,
                           run_mean=jnp.zeros((cout,), jnp.float32),
                           run_var=jnp.ones((cout,), jnp.float32), k=k))
    fc_w = 0.1 * jax.random.normal(keys[ki], (hidden_dim, output_dim),
                                   jnp.float32); ki += 1
    fc_b = 0.1 * jax.random.normal(keys[ki], (output_dim,), jnp.float32)
    return dict(blocks=blocks, fc_w=fc_w, fc_b=fc_b, ks=ks,
                input_dim=input_dim, hidden_dim=hidden_dim,
                output_dim=output_dim)


def prepare_params(raw, bn_eps=1e-5):
    """Fold eval-mode BN into conv weights, pad channels lane-dense to 128,
    flatten each conv weight to its im2col (K*Cp, Cp) layout, cast to bf16."""
    cp = _round_up(max(raw['input_dim'], raw['hidden_dim'],
                       2 * raw['hidden_dim']), LANE)
    op = _round_up(raw['output_dim'], LANE)
    blocks = []
    for blk in raw['blocks']:
        k, cin, cout = blk['w'].shape
        scale = blk['gamma'] / jnp.sqrt(blk['run_var'] + bn_eps)
        w_fold = blk['w'] * scale[None, None, :]
        shift = (blk['b'] - blk['run_mean']) * scale + blk['beta']
        w_pad = jnp.zeros((k, cp, cp), jnp.float32).at[:, :cin, :cout].set(w_fold)
        shift_pad = jnp.zeros((1, cp), jnp.float32).at[0, :cout].set(shift)
        blocks.append(dict(
            w_col=w_pad.reshape(k * cp, cp).astype(jnp.bfloat16),
            shift=shift_pad, k=k))
    h, o = raw['fc_w'].shape
    fc_w = jnp.zeros((cp, op), jnp.float32).at[:h, :o].set(raw['fc_w'])
    fc_b = jnp.zeros((1, op), jnp.float32).at[0, :o].set(raw['fc_b'])
    return dict(blocks=blocks, fc_w=fc_w.astype(jnp.bfloat16), fc_b=fc_b,
                ks=raw['ks'], cp=cp, op=op, output_dim=raw['output_dim'])


# ----------------------------------------------------------------------------
# Pure-JAX reference (mirrors the kernel's bf16 matmul / f32 accumulate math)
# ----------------------------------------------------------------------------
def fcn_reference(prep, x_ncl):
    n, c_in, L = x_ncl.shape
    cp = prep['cp']
    h = jnp.transpose(x_ncl, (0, 2, 1)).astype(jnp.bfloat16)
    h = jnp.pad(h, ((0, 0), (0, 0), (0, cp - c_in)))
    for blk in prep['blocks']:
        k = blk['k']
        pad_left = (k - 1) // 2
        xp = jnp.pad(h, ((0, 0), (pad_left, (k - 1) - pad_left), (0, 0)))
        xcol = jnp.concatenate([xp[:, t:t + L, :] for t in range(k)], axis=-1)
        acc = jnp.einsum('nlc,co->nlo', xcol, blk['w_col'],
                         preferred_element_type=jnp.float32)
        h = jnp.maximum(acc + blk['shift'][None], 0.0).astype(jnp.bfloat16)
    pooled = jnp.mean(h.astype(jnp.float32), axis=1)
    logits = jnp.dot(pooled.astype(jnp.bfloat16), prep['fc_w'],
                     preferred_element_type=jnp.float32) + prep['fc_b']
    return jnp.squeeze(logits[:, :prep['output_dim']])


# ----------------------------------------------------------------------------
if __name__ == "__main__":
    N, C_IN, L = 2, 4, 16            # batch, input_dim, sequence length
    HIDDEN, N_CLASSES = 32, 8
    DROPOUT = 0.1                    # identity in eval mode

    key = jax.random.PRNGKey(0)
    pkey, xkey = jax.random.split(key)
    raw = init_params(pkey, C_IN, HIDDEN, N_CLASSES)
    prep = prepare_params(raw)
    x = jax.random.normal(xkey, (N, C_IN, L), jnp.float32)   # NCL, like PyTorch

    logits = fcn_forward(prep, x)
    logits = jax.block_until_ready(logits)

    ref = fcn_reference(prep, x)
    assert logits.shape == (N, N_CLASSES), logits.shape
    err = jnp.max(jnp.abs(logits - ref))
    assert jnp.allclose(logits, ref, atol=2e-2, rtol=2e-2), f"max err {err}"
    print("KERNEL_OK")
</pallas_src>

<mosaic_0001>
module attributes {stable_mosaic.version = 11 : i64} {
  func.func @fcn_kernel(%arg0: i32, %arg1: memref<2x16x128xbf16, #tpu.memory_space<vmem>>, %arg2: memref<1024x128xbf16, #tpu.memory_space<vmem>>, %arg3: memref<1x128xf32, #tpu.memory_space<vmem>>, %arg4: memref<640x128xbf16, #tpu.memory_space<vmem>>, %arg5: memref<1x128xf32, #tpu.memory_space<vmem>>, %arg6: memref<384x128xbf16, #tpu.memory_space<vmem>>, %arg7: memref<1x128xf32, #tpu.memory_space<vmem>>, %arg8: memref<128x128xbf16, #tpu.memory_space<vmem>>, %arg9: memref<1x128xf32, #tpu.memory_space<vmem>>, %arg10: memref<2x128xf32, #tpu.memory_space<vmem>>, %arg11: memref<2x32x128xbf16, #tpu.memory_space<vmem>>, %arg12: memref<2x32x128xbf16, #tpu.memory_space<vmem>>) attributes {dimension_semantics = [#tpu.dimension_semantics<parallel>], iteration_bounds = array<i64: 1>, scalar_prefetch = 0 : i64, scratch_operands = 2 : i64, tpu.core_type = #tpu.core_type<tc>, window_params = [{transform_indices = @transform_0, window_bounds = array<i64: 2, 16, 128>}, {pipeline_mode = #tpu.pipeline_mode<synchronous>, transform_indices = @transform_1, window_bounds = array<i64: 1024, 128>}, {pipeline_mode = #tpu.pipeline_mode<synchronous>, transform_indices = @transform_2, window_bounds = array<i64: 1, 128>}, {pipeline_mode = #tpu.pipeline_mode<synchronous>, transform_indices = @transform_3, window_bounds = array<i64: 640, 128>}, {pipeline_mode = #tpu.pipeline_mode<synchronous>, transform_indices = @transform_4, window_bounds = array<i64: 1, 128>}, {pipeline_mode = #tpu.pipeline_mode<synchronous>, transform_indices = @transform_5, window_bounds = array<i64: 384, 128>}, {pipeline_mode = #tpu.pipeline_mode<synchronous>, transform_indices = @transform_6, window_bounds = array<i64: 1, 128>}, {pipeline_mode = #tpu.pipeline_mode<synchronous>, transform_indices = @transform_7, window_bounds = array<i64: 128, 128>}, {pipeline_mode = #tpu.pipeline_mode<synchronous>, transform_indices = @transform_8, window_bounds = array<i64: 1, 128>}, {transform_indices = @transform_9, window_bounds = array<i64: 2, 128>}]} {
    %cst = arith.constant 0.000000e+00 : bf16
    %0 = vector.broadcast %cst : bf16 to vector<2x32x128xbf16>
    %c0 = arith.constant 0 : index
    %c0_0 = arith.constant 0 : index
    %c0_1 = arith.constant 0 : index
    %1 = vector.load %arg11[%c0, %c0_0, %c0_1] : memref<2x32x128xbf16, #tpu.memory_space<vmem>>, vector<2x32x128xbf16>
    tpu.vector_store %arg11[%c0, %c0_0, %c0_1], %0 {strides = array<i32>} : memref<2x32x128xbf16, #tpu.memory_space<vmem>>, vector<2x32x128xbf16>,
    %cst_2 = arith.constant 0.000000e+00 : bf16
    %2 = vector.broadcast %cst_2 : bf16 to vector<2x32x128xbf16>
    %c0_3 = arith.constant 0 : index
    %c0_4 = arith.constant 0 : index
    %c0_5 = arith.constant 0 : index
    %3 = vector.load %arg12[%c0_3, %c0_4, %c0_5] : memref<2x32x128xbf16, #tpu.memory_space<vmem>>, vector<2x32x128xbf16>
    tpu.vector_store %arg12[%c0_3, %c0_4, %c0_5], %2 {strides = array<i32>} : memref<2x32x128xbf16, #tpu.memory_space<vmem>>, vector<2x32x128xbf16>,
    %c0_6 = arith.constant 0 : index
    %c0_7 = arith.constant 0 : index
    %c0_8 = arith.constant 0 : index
    %4 = vector.load %arg1[%c0_6, %c0_7, %c0_8] : memref<2x16x128xbf16, #tpu.memory_space<vmem>>, vector<2x16x128xbf16>
    %c0_9 = arith.constant 0 : index
    %c8 = arith.constant 8 : index
    %c0_10 = arith.constant 0 : index
    %5 = vector.load %arg11[%c0_9, %c8, %c0_10] : memref<2x32x128xbf16, #tpu.memory_space<vmem>>, vector<2x16x128xbf16>
    tpu.vector_store %arg11[%c0_9, %c8, %c0_10], %4 {strides = array<i32>} : memref<2x32x128xbf16, #tpu.memory_space<vmem>>, vector<2x16x128xbf16>,
    %c0_11 = arith.constant 0 : index
    %c5 = arith.constant 5 : index
    %c0_12 = arith.constant 0 : index
    %6 = vector.load %arg11[%c0_11, %c5, %c0_12] : memref<2x32x128xbf16, #tpu.memory_space<vmem>>, vector<2x16x128xbf16>
    %c0_13 = arith.constant 0 : index
    %c6 = arith.constant 6 : index
    %c0_14 = arith.constant 0 : index
    %7 = vector.load %arg11[%c0_13, %c6, %c0_14] : memref<2x32x128xbf16, #tpu.memory_space<vmem>>, vector<2x16x128xbf16>
    %c0_15 = arith.constant 0 : index
    %c7 = arith.constant 7 : index
    %c0_16 = arith.constant 0 : index
    %8 = vector.load %arg11[%c0_15, %c7, %c0_16] : memref<2x32x128xbf16, #tpu.memory_space<vmem>>, vector<2x16x128xbf16>
    %c0_17 = arith.constant 0 : index
    %c8_18 = arith.constant 8 : index
    %c0_19 = arith.constant 0 : index
    %9 = vector.load %arg11[%c0_17, %c8_18, %c0_19] : memref<2x32x128xbf16, #tpu.memory_space<vmem>>, vector<2x16x128xbf16>
    %c0_20 = arith.constant 0 : index
    %c9 = arith.constant 9 : index
    %c0_21 = arith.constant 0 : index
    %10 = vector.load %arg11[%c0_20, %c9, %c0_21] : memref<2x32x128xbf16, #tpu.memory_space<vmem>>, vector<2x16x128xbf16>
    %c0_22 = arith.constant 0 : index
    %c10 = arith.constant 10 : index
    %c0_23 = arith.constant 0 : index
    %11 = vector.load %arg11[%c0_22, %c10, %c0_23] : memref<2x32x128xbf16, #tpu.memory_space<vmem>>, vector<2x16x128xbf16>
    %c0_24 = arith.constant 0 : index
    %c11 = arith.constant 11 : index
    %c0_25 = arith.constant 0 : index
    %12 = vector.load %arg11[%c0_24, %c11, %c0_25] : memref<2x32x128xbf16, #tpu.memory_space<vmem>>, vector<2x16x128xbf16>
    %c0_26 = arith.constant 0 : index
    %c12 = arith.constant 12 : index
    %c0_27 = arith.constant 0 : index
    %13 = vector.load %arg11[%c0_26, %c12, %c0_27] : memref<2x32x128xbf16, #tpu.memory_space<vmem>>, vector<2x16x128xbf16>
    %14 = tpu.concatenate %6, %7, %8, %9, %10, %11, %12, %13 in 2 : vector<2x16x128xbf16>, vector<2x16x128xbf16>, vector<2x16x128xbf16>, vector<2x16x128xbf16>, vector<2x16x128xbf16>, vector<2x16x128xbf16>, vector<2x16x128xbf16>, vector<2x16x128xbf16> -> vector<2x16x1024xbf16>
    %15 = vector.shape_cast %14 : vector<2x16x1024xbf16> to vector<32x1024xbf16>
    %c0_28 = arith.constant 0 : index
    %c0_29 = arith.constant 0 : index
    %16 = vector.load %arg2[%c0_28, %c0_29] : memref<1024x128xbf16, #tpu.memory_space<vmem>>, vector<1024x128xbf16>
    %cst_30 = arith.constant dense<0.000000e+00> : vector<32x128xf32>
    %17 = tpu.matmul %15, %16, %cst_30 {dimension_numbers = #tpu.dot_dimension_numbers<[1], [0], [0], [1], [0, 0, 1, 1], [], []>} : vector<32x1024xbf16>, vector<1024x128xbf16>, vector<32x128xf32> -> vector<32x128xf32>
    %c0_31 = arith.constant 0 : index
    %c0_32 = arith.constant 0 : index
    %18 = vector.load %arg3[%c0_31, %c0_32] : memref<1x128xf32, #tpu.memory_space<vmem>>, vector<1x128xf32>
    %19 = vector.broadcast %18 : vector<1x128xf32> to vector<32x128xf32>
    %20 = arith.addf %17, %19 : vector<32x128xf32>
    %cst_33 = arith.constant 0.000000e+00 : f32
    %21 = vector.broadcast %cst_33 : f32 to vector<32x128xf32>
    %22 = arith.maximumf %20, %21 : vector<32x128xf32>
    %23 = vector.shape_cast %22 : vector<32x128xf32> to vector<2x16x128xf32>
    %24 = arith.truncf %23 : vector<2x16x128xf32> to vector<2x16x128xbf16>
    %c0_34 = arith.constant 0 : index
    %c8_35 = arith.constant 8 : index
    %c0_36 = arith.constant 0 : index
    %25 = vector.load %arg12[%c0_34, %c8_35, %c0_36] : memref<2x32x128xbf16, #tpu.memory_space<vmem>>, vector<2x16x128xbf16>
    tpu.vector_store %arg12[%c0_34, %c8_35, %c0_36], %24 {strides = array<i32>} : memref<2x32x128xbf16, #tpu.memory_space<vmem>>, vector<2x16x128xbf16>,
    %c0_37 = arith.constant 0 : index
    %c6_38 = arith.constant 6 : index
    %c0_39 = arith.constant 0 : index
    %26 = vector.load %arg12[%c0_37, %c6_38, %c0_39] : memref<2x32x128xbf16, #tpu.memory_space<vmem>>, vector<2x16x128xbf16>
    %c0_40 = arith.constant 0 : index
    %c7_41 = arith.constant 7 : index
    %c0_42 = arith.constant 0 : index
    %27 = vector.load %arg12[%c0_40, %c7_41, %c0_42] : memref<2x32x128xbf16, #tpu.memory_space<vmem>>, vector<2x16x128xbf16>
    %c0_43 = arith.constant 0 : index
    %c8_44 = arith.constant 8 : index
    %c0_45 = arith.constant 0 : index
    %28 = vector.load %arg12[%c0_43, %c8_44, %c0_45] : memref<2x32x128xbf16, #tpu.memory_space<vmem>>, vector<2x16x128xbf16>
    %c0_46 = arith.constant 0 : index
    %c9_47 = arith.constant 9 : index
    %c0_48 = arith.constant 0 : index
    %29 = vector.load %arg12[%c0_46, %c9_47, %c0_48] : memref<2x32x128xbf16, #tpu.memory_space<vmem>>, vector<2x16x128xbf16>
    %c0_49 = arith.constant 0 : index
    %c10_50 = arith.constant 10 : index
    %c0_51 = arith.constant 0 : index
    %30 = vector.load %arg12[%c0_49, %c10_50, %c0_51] : memref<2x32x128xbf16, #tpu.memory_space<vmem>>, vector<2x16x128xbf16>
    %31 = tpu.concatenate %26, %27, %28, %29, %30 in 2 : vector<2x16x128xbf16>, vector<2x16x128xbf16>, vector<2x16x128xbf16>, vector<2x16x128xbf16>, vector<2x16x128xbf16> -> vector<2x16x640xbf16>
    %32 = vector.shape_cast %31 : vector<2x16x640xbf16> to vector<32x640xbf16>
    %c0_52 = arith.constant 0 : index
    %c0_53 = arith.constant 0 : index
    %33 = vector.load %arg4[%c0_52, %c0_53] : memref<640x128xbf16, #tpu.memory_space<vmem>>, vector<640x128xbf16>
    %cst_54 = arith.constant dense<0.000000e+00> : vector<32x128xf32>
    %34 = tpu.matmul %32, %33, %cst_54 {dimension_numbers = #tpu.dot_dimension_numbers<[1], [0], [0], [1], [0, 0, 1, 1], [], []>} : vector<32x640xbf16>, vector<640x128xbf16>, vector<32x128xf32> -> vector<32x128xf32>
    %c0_55 = arith.constant 0 : index
    %c0_56 = arith.constant 0 : index
    %35 = vector.load %arg5[%c0_55, %c0_56] : memref<1x128xf32, #tpu.memory_space<vmem>>, vector<1x128xf32>
    %36 = vector.broadcast %35 : vector<1x128xf32> to vector<32x128xf32>
    %37 = arith.addf %34, %36 : vector<32x128xf32>
    %cst_57 = arith.constant 0.000000e+00 : f32
    %38 = vector.broadcast %cst_57 : f32 to vector<32x128xf32>
    %39 = arith.maximumf %37, %38 : vector<32x128xf32>
    %40 = vector.shape_cast %39 : vector<32x128xf32> to vector<2x16x128xf32>
    %41 = arith.truncf %40 : vector<2x16x128xf32> to vector<2x16x128xbf16>
    %c0_58 = arith.constant 0 : index
    %c8_59 = arith.constant 8 : index
    %c0_60 = arith.constant 0 : index
    %42 = vector.load %arg11[%c0_58, %c8_59, %c0_60] : memref<2x32x128xbf16, #tpu.memory_space<vmem>>, vector<2x16x128xbf16>
    tpu.vector_store %arg11[%c0_58, %c8_59, %c0_60], %41 {strides = array<i32>} : memref<2x32x128xbf16, #tpu.memory_space<vmem>>, vector<2x16x128xbf16>,
    %c0_61 = arith.constant 0 : index
    %c7_62 = arith.constant 7 : index
    %c0_63 = arith.constant 0 : index
    %43 = vector.load %arg11[%c0_61, %c7_62, %c0_63] : memref<2x32x128xbf16, #tpu.memory_space<vmem>>, vector<2x16x128xbf16>
    %c0_64 = arith.constant 0 : index
    %c8_65 = arith.constant 8 : index
    %c0_66 = arith.constant 0 : index
    %44 = vector.load %arg11[%c0_64, %c8_65, %c0_66] : memref<2x32x128xbf16, #tpu.memory_space<vmem>>, vector<2x16x128xbf16>
    %c0_67 = arith.constant 0 : index
    %c9_68 = arith.constant 9 : index
    %c0_69 = arith.constant 0 : index
    %45 = vector.load %arg11[%c0_67, %c9_68, %c0_69] : memref<2x32x128xbf16, #tpu.memory_space<vmem>>, vector<2x16x128xbf16>
    %46 = tpu.concatenate %43, %44, %45 in 2 : vector<2x16x128xbf16>, vector<2x16x128xbf16>, vector<2x16x128xbf16> -> vector<2x16x384xbf16>
    %47 = vector.shape_cast %46 : vector<2x16x384xbf16> to vector<32x384xbf16>
    %c0_70 = arith.constant 0 : index
    %c0_71 = arith.constant 0 : index
    %48 = vector.load %arg6[%c0_70, %c0_71] : memref<384x128xbf16, #tpu.memory_space<vmem>>, vector<384x128xbf16>
    %cst_72 = arith.constant dense<0.000000e+00> : vector<32x128xf32>
    %49 = tpu.matmul %47, %48, %cst_72 {dimension_numbers = #tpu.dot_dimension_numbers<[1], [0], [0], [1], [0, 0, 1, 1], [], []>} : vector<32x384xbf16>, vector<384x128xbf16>, vector<32x128xf32> -> vector<32x128xf32>
    %c0_73 = arith.constant 0 : index
    %c0_74 = arith.constant 0 : index
    %50 = vector.load %arg7[%c0_73, %c0_74] : memref<1x128xf32, #tpu.memory_space<vmem>>, vector<1x128xf32>
    %51 = vector.broadcast %50 : vector<1x128xf32> to vector<32x128xf32>
    %52 = arith.addf %49, %51 : vector<32x128xf32>
    %cst_75 = arith.constant 0.000000e+00 : f32
    %53 = vector.broadcast %cst_75 : f32 to vector<32x128xf32>
    %54 = arith.maximumf %52, %53 : vector<32x128xf32>
    %55 = vector.shape_cast %54 : vector<32x128xf32> to vector<2x16x128xf32>
    %56 = arith.truncf %55 : vector<2x16x128xf32> to vector<2x16x128xbf16>
    %c0_76 = arith.constant 0 : index
    %c8_77 = arith.constant 8 : index
    %c0_78 = arith.constant 0 : index
    %57 = vector.load %arg12[%c0_76, %c8_77, %c0_78] : memref<2x32x128xbf16, #tpu.memory_space<vmem>>, vector<2x16x128xbf16>
    tpu.vector_store %arg12[%c0_76, %c8_77, %c0_78], %56 {strides = array<i32>} : memref<2x32x128xbf16, #tpu.memory_space<vmem>>, vector<2x16x128xbf16>,
    %c0_79 = arith.constant 0 : index
    %c8_80 = arith.constant 8 : index
    %c0_81 = arith.constant 0 : index
    %58 = vector.load %arg12[%c0_79, %c8_80, %c0_81] : memref<2x32x128xbf16, #tpu.memory_space<vmem>>, vector<2x16x128xbf16>
    %59 = arith.extf %58 : vector<2x16x128xbf16> to vector<2x16x128xf32>
    %cst_82 = arith.constant dense<0.000000e+00> : vector<2x128xf32>
    %60 = vector.multi_reduction <add>, %59, %cst_82 [1] : vector<2x16x128xf32> to vector<2x128xf32>
    %cst_83 = arith.constant 1.600000e+01 : f32
    %61 = vector.broadcast %cst_83 : f32 to vector<2x128xf32>
    %62 = arith.divf %60, %61 : vector<2x128xf32>
    %63 = arith.truncf %62 : vector<2x128xf32> to vector<2x128xbf16>
    %c0_84 = arith.constant 0 : index
    %c0_85 = arith.constant 0 : index
    %64 = vector.load %arg8[%c0_84, %c0_85] : memref<128x128xbf16, #tpu.memory_space<vmem>>, vector<128x128xbf16>
    %cst_86 = arith.constant dense<0.000000e+00> : vector<2x128xf32>
    %65 = tpu.matmul %63, %64, %cst_86 {dimension_numbers = #tpu.dot_dimension_numbers<[1], [0], [0], [1], [0, 0, 1, 1], [], []>} : vector<2x128xbf16>, vector<128x128xbf16>, vector<2x128xf32> -> vector<2x128xf32>
    %c0_87 = arith.constant 0 : index
    %c0_88 = arith.constant 0 : index
    %66 = vector.load %arg9[%c0_87, %c0_88] : memref<1x128xf32, #tpu.memory_space<vmem>>, vector<1x128xf32>
    %67 = vector.broadcast %66 : vector<1x128xf32> to vector<2x128xf32>
    %68 = arith.addf %65, %67 : vector<2x128xf32>
    %c0_89 = arith.constant 0 : index
    %c0_90 = arith.constant 0 : index
    %69 = vector.load %arg10[%c0_89, %c0_90] : memref<2x128xf32, #tpu.memory_space<vmem>>, vector<2x128xf32>
    tpu.vector_store %arg10[%c0_89, %c0_90], %68 {strides = array<i32>} : memref<2x128xf32, #tpu.memory_space<vmem>>, vector<2x128xf32>,
    return
  }
  func.func @transform_0(%arg0: i32) -> (i32, i32, i32) {
    %c0_i32 = arith.constant 0 : i32
    %c0_i32_0 = arith.constant 0 : i32
    %c0_i32_1 = arith.constant 0 : i32
    return %arg0, %c0_i32, %c0_i32_0 : i32, i32, i32
  }
  func.func @transform_1(%arg0: i32) -> (i32, i32) {
    %c0_i32 = arith.constant 0 : i32
    %c0_i32_0 = arith.constant 0 : i32
    %c0_i32_1 = arith.constant 0 : i32
    return %c0_i32, %c0_i32_0 : i32, i32
  }
  func.func @transform_2(%arg0: i32) -> (i32, i32) {
    %c0_i32 = arith.constant 0 : i32
    %c0_i32_0 = arith.constant 0 : i32
    %c0_i32_1 = arith.constant 0 : i32
    return %c0_i32, %c0_i32_0 : i32, i32
  }
  func.func @transform_3(%arg0: i32) -> (i32, i32) {
    %c0_i32 = arith.constant 0 : i32
    %c0_i32_0 = arith.constant 0 : i32
    %c0_i32_1 = arith.constant 0 : i32
    return %c0_i32, %c0_i32_0 : i32, i32
  }
  func.func @transform_4(%arg0: i32) -> (i32, i32) {
    %c0_i32 = arith.constant 0 : i32
    %c0_i32_0 = arith.constant 0 : i32
    %c0_i32_1 = arith.constant 0 : i32
    return %c0_i32, %c0_i32_0 : i32, i32
  }
  func.func @transform_5(%arg0: i32) -> (i32, i32) {
    %c0_i32 = arith.constant 0 : i32
    %c0_i32_0 = arith.constant 0 : i32
    %c0_i32_1 = arith.constant 0 : i32
    return %c0_i32, %c0_i32_0 : i32, i32
  }
  func.func @transform_6(%arg0: i32) -> (i32, i32) {
    %c0_i32 = arith.constant 0 : i32
    %c0_i32_0 = arith.constant 0 : i32
    %c0_i32_1 = arith.constant 0 : i32
    return %c0_i32, %c0_i32_0 : i32, i32
  }
  func.func @transform_7(%arg0: i32) -> (i32, i32) {
    %c0_i32 = arith.constant 0 : i32
    %c0_i32_0 = arith.constant 0 : i32
    %c0_i32_1 = arith.constant 0 : i32
    return %c0_i32, %c0_i32_0 : i32, i32
  }
  func.func @transform_8(%arg0: i32) -> (i32, i32) {
    %c0_i32 = arith.constant 0 : i32
    %c0_i32_0 = arith.constant 0 : i32
    %c0_i32_1 = arith.constant 0 : i32
    return %c0_i32, %c0_i32_0 : i32, i32
  }
  func.func @transform_9(%arg0: i32) -> (i32, i32) {
    %c0_i32 = arith.constant 0 : i32
    %c0_i32_0 = arith.constant 0 : i32
    return %arg0, %c0_i32 : i32, i32
  }
}

</mosaic_0001>

<bundles_post_ra>
// kernel: tpu_custom_call.1
= control target key start
LH: loop header
LB: loop body
LE: loop exit
PB: predicated region body
PF: predicated region fallthrough
CT: control target
= control target key end

     0   :  { %14 = vsyncpa [#allocation5], 0  ;;  %s3604_s0 = inlined_call_operand.hbm [shape: bf16[2,16,128], index: 0, kind: input, shape index: {}]   ;;  %s3605_s1 = inlined_call_operand.hbm [shape: bf16[1024,128], index: 1, kind: input, shape index: {}]   ;;  %s3606_s2 = inlined_call_operand.vmem [shape: f32[1,128], index: 2, kind: input, shape index: {}]   ;;  %s3607_s3 = inlined_call_operand.hbm [shape: bf16[640,128], index: 3, kind: input, shape index: {}]   ;;  %s3608_s4 = inlined_call_operand.vmem [shape: f32[1,128], index: 4, kind: input, shape index: {}]   ;;  %s3609_s5 = inlined_call_operand.hbm [shape: bf16[384,128], index: 5, kind: input, shape index: {}]   ;;  %s3610_s6 = inlined_call_operand.vmem [shape: f32[1,128], index: 6, kind: input, shape index: {}]   ;;  %s3611_s7 = inlined_call_operand.hbm [shape: bf16[128,128], index: 7, kind: input, shape index: {}]   ;;  %s3612_s8 = inlined_call_operand.vmem [shape: f32[1,128], index: 8, kind: input, shape index: {}]   ;;  %s3613_s9 = inlined_call_operand.hbm [shape: f32[2,128], index: 9, kind: output, shape index: {}]  }
   0x1   :  { %15 = vsyncpa [#allocation8], 0 }
   0x2   :  { %16 = vsyncpa [#allocation11], 0 }
   0x3   :  { %17 = vsyncpa [#allocation6], 0  ;;  %s3316_s30 = smov [#allocation7]   ;;  %s3317_s11 = smov [#allocation10]  }
   0x4   :  { %s35_s10 = sshll.u32 %s3316_s30, 4  ;;  %s63_s12 = sshll.u32 %s3317_s11, 4  ;;  %s36_s10 = int_to_ptr.vmem [resolvable:$true] %s35_s10  ;;  %s3377_s12 = int_to_ptr.vmem [resolvable:$true] %s63_s12 }
   0x5   :  { %s3176_s15 = scalar_lea.hbm %s3605_s1, 8192 }
   0x6   :  { %p3177_p0 = scmp.ne.s32.totalorder %s3605_s1, %s3176_s15  ;;  %p3180_p1 = scmp.lt.u32.totalorder %s3176_s15, %s3605_s1 }
   0x8   :  { %p3182_p2 = pnand %p3180_p1, %p3177_p0 }
   0xa   :  { %3185 = shalt.err (!%p3182_p2)
}
   0xb   :  { %s3186_s20 = scalar_lea.vmem %s36_s10, 8192  ;;  %p3191_p4 = scmp.lt.s32.totalorder %s36_s10, %s36_s10 }
   0xc   :  { %p3187_p3 = scmp.ne.s32.totalorder %s36_s10, %s3186_s20  ;;  %p3192_p5 = scmp.lt.s32.totalorder %s3186_s20, %s3186_s20 }
   0xe   :  { %p3193_p6 = por %p3192_p5, %p3191_p4 }
  0x10   :  { %p3194_p7 = pnand %p3193_p6, %p3187_p3 }
  0x12   :  { %3197 = shalt.err (!%p3194_p7)
}
  0x13   :  { %s3318_s21 = smov 64   ;;  %s3319_s22 = smov 4  }
  0x14   :  { %41 = dma.hbm_to_vmem [thread:$0]  %s3605_s1, 8192, %s36_s10, [#allocation8], %s3318_s21, %s3318_s21, %s3319_s22  }
  0x15   :  { %s3198_s27 = scalar_lea.hbm %s3609_s5, 3072 }
  0x16   :  { %p3199_p8 = scmp.ne.s32.totalorder %s3609_s5, %s3198_s27  ;;  %p3202_p9 = scmp.lt.u32.totalorder %s3198_s27, %s3609_s5 }
  0x18   :  { %p3204_p10 = pnand %p3202_p9, %p3199_p8 }
  0x1a   :  { %3207 = shalt.err (!%p3204_p10)
}
  0x1b   :  { %s3208_s13 = scalar_lea.vmem %s3377_s12, 3072  ;;  %p3213_p12 = scmp.lt.s32.totalorder %s3377_s12, %s3377_s12 }
  0x1c   :  { %p3209_p11 = scmp.ne.s32.totalorder %s3377_s12, %s3208_s13  ;;  %p3214_p13 = scmp.lt.s32.totalorder %s3208_s13, %s3208_s13 }
  0x1e   :  { %p3215_p0 = por %p3214_p13, %p3213_p12 }
  0x20   :  { %p3216_p1 = pnand %p3215_p0, %p3209_p11 }
  0x22   :  { %3219 = shalt.err (!%p3216_p1)
}
  0x23   :  { %69 = dma.hbm_to_vmem [thread:$0]  %s3609_s5, 3072, %s3377_s12, [#allocation11], %s3318_s21, %s3318_s21, %s3319_s22  }
  0x24   :  { %s3320_s14 = smov [#allocation4]   ;;  %s3321_s16 = smov [#allocation9]  }
  0x25   :  { %s23_s15 = sshll.u32 %s3320_s14, 4  ;;  %s49_s17 = sshll.u32 %s3321_s16, 4  ;;  %s24_s15 = int_to_ptr.vmem [resolvable:$true] %s23_s15  ;;  %s3414_s17 = int_to_ptr.vmem [resolvable:$true] %s49_s17 }
  0x26   :  { %s3220_s20 = scalar_lea.hbm %s3604_s0, 256 }
  0x27   :  { %p3221_p2 = scmp.ne.s32.totalorder %s3604_s0, %s3220_s20  ;;  %p3224_p3 = scmp.lt.u32.totalorder %s3220_s20, %s3604_s0 }
  0x29   :  { %p3226_p4 = pnand %p3224_p3, %p3221_p2 }
  0x2b   :  { %3229 = shalt.err (!%p3226_p4)
}
  0x2c   :  { %s3230_s5 = scalar_lea.vmem %s24_s15, 256  ;;  %p3235_p6 = scmp.lt.s32.totalorder %s24_s15, %s24_s15 }
  0x2d   :  { %p3231_p5 = scmp.ne.s32.totalorder %s24_s15, %s3230_s5  ;;  %p3236_p7 = scmp.lt.s32.totalorder %s3230_s5, %s3230_s5 }
  0x2f   :  { %p3237_p8 = por %p3236_p7, %p3235_p6 }
  0x31   :  { %p3238_p9 = pnand %p3237_p8, %p3231_p5 }
  0x33   :  { %3241 = shalt.err (!%p3238_p9)
}
  0x34   :  { %29 = dma.hbm_to_vmem [thread:$0]  %s3604_s0, 256, %s24_s15, [#allocation5], %s3318_s21, %s3318_s21, %s3319_s22  }
  0x35   :  { %s3242_s30 = scalar_lea.hbm %s3607_s3, 5120 }
  0x36   :  { %p3243_p10 = scmp.ne.s32.totalorder %s3607_s3, %s3242_s30  ;;  %p3246_p11 = scmp.lt.u32.totalorder %s3242_s30, %s3607_s3 }
  0x38   :  { %p3248_p12 = pnand %p3246_p11, %p3243_p10 }
  0x3a   :  { %3251 = shalt.err (!%p3248_p12)
}
  0x3b   :  { %s3252_s14 = scalar_lea.vmem %s3414_s17, 5120  ;;  %p3257_p0 = scmp.lt.s32.totalorder %s3414_s17, %s3414_s17 }
  0x3c   :  { %p3253_p13 = scmp.ne.s32.totalorder %s3414_s17, %s3252_s14  ;;  %p3258_p1 = scmp.lt.s32.totalorder %s3252_s14, %s3252_s14 }
  0x3e   :  { %p3259_p2 = por %p3258_p1, %p3257_p0 }
  0x40   :  { %p3260_p3 = pnand %p3259_p2, %p3253_p13 }
  0x42   :  { %3263 = shalt.err (!%p3260_p3)
}
  0x43   :  { %55 = dma.hbm_to_vmem [thread:$0]  %s3607_s3, 5120, %s3414_s17, [#allocation8], %s3318_s21, %s3318_s21, %s3319_s22  }
  0x44   :  { %s3322_s16 = smov [#allocation12]   ;;  %s3264_s23 = scalar_lea.hbm %s3611_s7, 1024 }
  0x45   :  { %s77_s18 = sshll.u32 %s3322_s16, 4  ;;  %p3265_p4 = scmp.ne.s32.totalorder %s3611_s7, %s3264_s23  ;;  %s78_s18 = int_to_ptr.vmem [resolvable:$true] %s77_s18 }
  0x46   :  { %p3268_p5 = scmp.lt.u32.totalorder %s3264_s23, %s3611_s7 }
  0x48   :  { %p3270_p6 = pnand %p3268_p5, %p3265_p4 }
  0x4a   :  { %3273 = shalt.err (!%p3270_p6)
}
  0x4b   :  { %s3274_s12 = scalar_lea.vmem %s78_s18, 1024  ;;  %p3279_p8 = scmp.lt.s32.totalorder %s78_s18, %s78_s18 }
  0x4c   :  { %p3275_p7 = scmp.ne.s32.totalorder %s78_s18, %s3274_s12  ;;  %p3280_p9 = scmp.lt.s32.totalorder %s3274_s12, %s3274_s12 }
  0x4e   :  { %p3281_p10 = por %p3280_p9, %p3279_p8 }
  0x50   :  { %p3282_p11 = pnand %p3281_p10, %p3275_p7 }
  0x52   :  { %3285 = shalt.err (!%p3282_p11)
}
  0x53   :  { %83 = dma.hbm_to_vmem [thread:$0]  %s3611_s7, 1024, %s78_s18, [#allocation11], %s3318_s21, %s3318_s21, %s3319_s22  }
  0x54   :  { %3308 = dma.done.wait [#allocation5], 256  }
  0x55   :  { %3309 = vsyncadd [#allocation5], 4294967040 }
  0x56   :  { %3310 = dma.done.wait [#allocation8], 13312  }
  0x57   :  { %3311 = vsyncadd [#allocation8], 4294953984 }
  0x58   :  { %3312 = dma.done.wait [#allocation11], 4096  }
  0x59   :  { %3313 = vsyncadd [#allocation11], 4294963200  ;;  %v3323_v0 = vmov 0   ;;  %v3036_v1 = vld [vmem:[#allocation7 + $0x40] sm:$0xff]   ;;  %v3040_v5 = vld [vmem:[#allocation7 + $0x48] sm:$0xff]   ;;  %vm187_vm3 = vcmask 1046528  }
  0x5a   :  { %102 = vst [vmem:[#allocation2] sm:$0xff] %v3323_v0  ;;  %103 = vst [vmem:[#allocation2 + $0x8] sm:$0xff] %v3323_v0  ;;  %v3037_v2 = vld [vmem:[#allocation7 + $0xc0] sm:$0xff]   ;;  %2740 = vmatprep.subr.bf16.mxu0 %v3036_v1  ;;  %v3041_v6 = vld [vmem:[#allocation7 + $0xc8] sm:$0xff]   ;;  %vm152_vm0 = vsmask.f32 7424 }
  0x5b   :  { %104 = vst [vmem:[#allocation2 + $0x10] sm:$0xff] %v3323_v0  ;;  %105 = vst [vmem:[#allocation2 + $0x18] sm:$0xff] %v3323_v0  ;;  %v3038_v3 = vld [vmem:[#allocation7] sm:$0xff]   ;;  %2768 = vmatprep.subr.bf16.mxu1 %v3037_v2  ;;  %v3042_v7 = vld [vmem:[#allocation7 + $0x8] sm:$0xff]   ;;  %vm194_vm1 = vsmask.f32 6400 }
  0x5c   :  { %106 = vst [vmem:[#allocation3] sm:$0xff] %v3323_v0  ;;  %107 = vst [vmem:[#allocation3 + $0x8] sm:$0xff] %v3323_v0  ;;  %v3039_v4 = vld [vmem:[#allocation7 + $0x80] sm:$0xff]   ;;  %2741 = vmatpush3.bf16.msra.mxu0 %v3038_v3  ;;  %v3043_v8 = vld [vmem:[#allocation7 + $0x88] sm:$0xff]   ;;  %vm240_vm2 = vsmask.f32 5376 }
  0x5d   :  { %108 = vst [vmem:[#allocation3 + $0x10] sm:$0xff] %v3323_v0  ;;  %109 = vst [vmem:[#allocation3 + $0x18] sm:$0xff] %v3323_v0  ;;  %2769 = vmatpush3.bf16.msra.mxu1 %v3039_v4  ;;  %2742 = vmatprep.subr.bf16.mxu0 %v3040_v5  ;;  %v3044_v9 = vld [vmem:[#allocation7 + $0x50] sm:$0xff]   ;;  %v3048_v13 = vld [vmem:[#allocation7 + $0x58] sm:$0xff]   ;;  %vm233_vm4 = vcmask 1045504   ;;  %vm279_vm6 = vcmask 1044480  }
  0x5e   :  { %2770 = vmatprep.subr.bf16.mxu1 %v3041_v6  ;;  %v3045_v10 = vld [vmem:[#allocation7 + $0xd0] sm:$0xff]   ;;  %v3049_v14 = vld [vmem:[#allocation7 + $0xd8] sm:$0xff]   ;;  %v3052_v17 = vld [vmem:[#allocation7 + $0x60] sm:$0xff]   ;;  %vm286_vm5 = vsmask.f32 4352  ;;  %vm3325_vm7 = vmmov 0  }
  0x5f   :  { %v3046_v11 = vld [vmem:[#allocation7 + $0x10] sm:$0xff]   ;;  %v3050_v15 = vld [vmem:[#allocation7 + $0x18] sm:$0xff]   ;;  %v3053_v18 = vld [vmem:[#allocation7 + $0xe0] sm:$0xff]   ;;  %vm2427_vm8 = vcmask 1043456   ;;  %vm2486_vm9 = vcmask 1041409   ;;  %s3326_s29 = smov [#allocation13]  }
  0x60   :  { %2743 = vmatpush3.bf16.msra.mxu0 %v3042_v7  ;;  %v3047_v12 = vld [vmem:[#allocation7 + $0x90] sm:$0xff]   ;;  %v3051_v16 = vld [vmem:[#allocation7 + $0x98] sm:$0xff]   ;;  %v3054_v19 = vld [vmem:[#allocation7 + $0x20] sm:$0xff]   ;;  %s2585_s30 = sshll.u32 %s3326_s29, 4  ;;  %s2586_s30 = int_to_ptr.vmem [resolvable:$true] %s2585_s30 }
  0x61   :  { %2771 = vmatpush3.bf16.msra.mxu1 %v3043_v8  ;;  %2744 = vmatprep.subr.bf16.mxu0 %v3044_v9  ;;  %v3055_v20 = vld [vmem:[#allocation7 + $0xa0] sm:$0xff]   ;;  %v3056_v21 = vld [vmem:[#allocation7 + $0x68] sm:$0xff]   ;;  %v3060_v25 = vld [vmem:[#allocation7 + $0x70] sm:$0xff]   ;;  %s3286_s11 = scalar_lea.vmem %s2586_s30, 32  ;;  %p3291_p13 = scmp.lt.s32.totalorder %s2586_s30, %s2586_s30 }
  0x62   :  { %2772 = vmatprep.subr.bf16.mxu1 %v3045_v10  ;;  %v3057_v22 = vld [vmem:[#allocation7 + $0xe8] sm:$0xff]   ;;  %v3061_v26 = vld [vmem:[#allocation7 + $0xf0] sm:$0xff]   ;;  %v3064_v29 = vld [vmem:[#allocation7 + $0x78] sm:$0xff]   ;;  %p3287_p12 = scmp.ne.s32.totalorder %s2586_s30, %s3286_s11  ;;  %p3292_p0 = scmp.lt.s32.totalorder %s3286_s11, %s3286_s11 }
  0x63   :  { %v3058_v23 = vld [vmem:[#allocation7 + $0x28] sm:$0xff]   ;;  %v3062_v27 = vld [vmem:[#allocation7 + $0x30] sm:$0xff]   ;;  %v3065_v30 = vld [vmem:[#allocation7 + $0xf8] sm:$0xff]  }
  0x64   :  { %2745 = vmatpush3.bf16.msra.mxu0 %v3046_v11  ;;  %v3059_v24 = vld [vmem:[#allocation7 + $0xa8] sm:$0xff]   ;;  %v3063_v28 = vld [vmem:[#allocation7 + $0xb0] sm:$0xff]   ;;  %v3066_v31 = vld [vmem:[#allocation7 + $0x38] sm:$0xff]   ;;  %p3293_p1 = por %p3292_p0, %p3291_p13 }
  0x65   :  { %2773 = vmatpush3.bf16.msra.mxu1 %v3047_v12  ;;  %2746 = vmatprep.subr.bf16.mxu0 %v3048_v13  ;;  %v3067_v32 = vld [vmem:[#allocation7 + $0xb8] sm:$0xff]   ;;  %v3068_v33 = vld [vmem:[#allocation4] ss:$0 sps:$4 sm:$0xff]   ;;  %v3069_v34 = vld [vmem:[#allocation4 + $0x4] ss:$0 sps:$4 sm:$0xff]  }
  0x66   :  { %2774 = vmatprep.subr.bf16.mxu1 %v3049_v14  ;;  %130 = vst [vmem:[#allocation2] sm:$0xf0] %v3068_v33  ;;  %v3070_v35 = vld [vmem:[#allocation7 + $0x140] sm:$0xff]   ;;  %131 = vst [vmem:[#allocation2 + $0x8] sm:$0xf] %v3069_v34  ;;  %p3294_p2 = pnand %p3293_p1, %p3287_p12 }
  0x67   :  { %v3071_v36 = vld [vmem:[#allocation7 + $0x1c0] sm:$0xff]  }
  0x68   :  { %2747 = vmatpush3.bf16.msra.mxu0 %v3050_v15 }
  0x69   :  { %2775 = vmatpush3.bf16.msra.mxu1 %v3051_v16  ;;  %2748 = vmatprep.subr.bf16.mxu0 %v3052_v17 }
  0x6a   :  { %2776 = vmatprep.subr.bf16.mxu1 %v3053_v18 }
  0x6c   :  { %2749 = vmatpush3.bf16.msra.mxu0 %v3054_v19 }
  0x6d   :  { %2777 = vmatpush3.bf16.msra.mxu1 %v3055_v20  ;;  %2750 = vmatprep.subr.bf16.mxu0 %v3056_v21  ;;  %v138_v37 = vld [vmem:[#allocation2] sm:$0xf8]  ;;  %v135_v40 = vld [vmem:[#allocation2 + $0x8] sm:$0x7] }
  0x6e   :  { %2778 = vmatprep.subr.bf16.mxu1 %v3057_v22  ;;  %v3466_v38 = vld [vmem:[#allocation2] sm:$0xf0]  ;;  %v154_v41 = vshrl.u32 %v138_v37, 16  ;;  %v156_v42 = vshll.u32 %v138_v37, 16  ;;  %v140_v43 = vld [vmem:[#allocation2 + $0x8] sm:$0xf] }
  0x6f   :  { %v134_v39 = vld [vmem:[#allocation2] sm:$0xfc]  ;;  %v161_v44 = vshll.u32 %v135_v40, 16  ;;  %v165_v45 = vshrl.u32 %v135_v40, 16  ;;  %v196_v46 = vshrl.u32 %v3466_v38, 16  ;;  %v199_v47 = vshll.u32 %v3466_v38, 16 }
  0x70   :  { %2751 = vmatpush3.bf16.msra.mxu0 %v3058_v23  ;;  %v158_v48 = vrot.slane %v156_v42, 1  ;;  %v204_v49 = vshrl.u32 %v140_v43, 16  ;;  %v207_v50 = vshll.u32 %v140_v43, 16  ;;  %v322_v51 = vshrl.u32 %v134_v39, 16 }
  0x71   :  { %2779 = vmatpush3.bf16.msra.mxu1 %v3059_v24  ;;  %2752 = vmatprep.subr.bf16.mxu0 %v3060_v25  ;;  %v163_v52 = vrot.slane %v161_v44, 1  ;;  %v198_v53 = vrot.slane %v196_v46, 1  ;;  %v201_v54 = vrot.slane %v199_v47, 2  ;;  %v325_v55 = vshll.u32 %v134_v39, 16  ;;  %v3072_v24 = vld [vmem:[#allocation7 + $0x100] sm:$0xff]   ;;  %v3076_v39 = vld [vmem:[#allocation7 + $0x108] sm:$0xff]  }
  0x72   :  { %2780 = vmatprep.subr.bf16.mxu1 %v3061_v26  ;;  %v159_v56 = vor.u32 %v158_v48, %v154_v41  ;;  %v206_v57 = vrot.slane %v204_v49, 1  ;;  %v209_v58 = vrot.slane %v207_v50, 2  ;;  %v324_v59 = vrot.slane %v322_v51, 2  ;;  %v3075_v48 = vld [vmem:[#allocation7 + $0x1c8] sm:$0xff]   ;;  %v3090_v49 = vld [vmem:[#allocation4 + $0x8] ss:$0 sps:$4 sm:$0xff]  }
  0x73   :  { %v167_v60 = vor.u32 %v165_v45, %v163_v52  ;;  %v202_v61 = vor.u32 %v201_v54, %v198_v53  ;;  %v327_v62 = vrot.slane %v325_v55, 3  ;;  %v329_v63 = vrot.slane %v165_v45, 2  ;;  %v3078_v45 = vld [vmem:[#allocation7 + $0x150] sm:$0xff]   ;;  %v3091_v50 = vld [vmem:[#allocation4 + $0xc] ss:$0 sps:$4 sm:$0xff]   ;;  %v3077_v54 = vld [vmem:[#allocation7 + $0x188] sm:$0xff]  }
  0x74   :  { %2753 = vmatpush3.bf16.msra.mxu0 %v3062_v27  ;;  %v164_v0 = vsel %vm152_vm0, %v159_v56, %v163_v52  ;;  %v210_v1 = vor.u32 %v209_v58, %v206_v57  ;;  %v330_v2 = vrot.slane %v161_v44, 3  ;;  %v188_v3 = vrot.slane %v138_v37, 1  ;;  %v3073_v44 = vld [vmem:[#allocation7 + $0x180] sm:$0xff]   ;;  %v3080_v52 = vld [vmem:[#allocation7 + $0x110] sm:$0xff]   ;;  %v3082_v53 = vld [vmem:[#allocation7 + $0x158] sm:$0xff]  }
  0x75   :  { %2781 = vmatpush3.bf16.msra.mxu1 %v3063_v28  ;;  %2754 = vmatprep.subr.bf16.mxu0 %v3064_v29  ;;  %v334_v4 = vshrl.u32 %v164_v0, 16  ;;  %v337_v5 = vshll.u32 %v164_v0, 16  ;;  %v342_v6 = vshrl.u32 %v167_v60, 16  ;;  %v345_v7 = vshll.u32 %v167_v60, 16  ;;  %132 = vst [vmem:[#allocation2 + $0x10] sm:$0xf0] %v3090_v49 }
  0x76   :  { %2782 = vmatprep.subr.bf16.mxu1 %v3065_v30  ;;  %v211_v8 = vsel %vm194_vm1, %v202_v61, %v210_v1  ;;  %v376_v9 = vshrl.u32 %v210_v1, 16  ;;  %v379_v10 = vshll.u32 %v210_v1, 16  ;;  %v328_v11 = vor.u32 %v327_v62, %v324_v59  ;;  %133 = vst [vmem:[#allocation2 + $0x18] sm:$0xf] %v3091_v50  ;;  %v3079_v55 = vld [vmem:[#allocation7 + $0x1d0] sm:$0xff]   ;;  %v3084_v57 = vld [vmem:[#allocation7 + $0x118] sm:$0xff]  }
  0x77   :  { %v336_v12 = vrot.slane %v334_v4, 2  ;;  %v339_v13 = vrot.slane %v337_v5, 3  ;;  %v344_v14 = vrot.slane %v342_v6, 2  ;;  %v347_v15 = vrot.slane %v345_v7, 3  ;;  %v3081_v56 = vld [vmem:[#allocation7 + $0x190] sm:$0xff]   ;;  %v3083_v58 = vld [vmem:[#allocation7 + $0x1d8] sm:$0xff]  }
  0x78   :  { %2755 = vmatpush3.bf16.msra.mxu0 %v3066_v31  ;;  %v368_v16 = vshrl.u32 %v211_v8, 16  ;;  %v371_v17 = vshll.u32 %v211_v8, 16  ;;  %v378_v18 = vrot.slane %v376_v9, 2  ;;  %v381_v19 = vrot.slane %v379_v10, 3  ;;  %v3086_v59 = vld [vmem:[#allocation7 + $0x160] sm:$0xff]   ;;  %v3092_v61 = vld [vmem:[#allocation7 + $0x168] sm:$0xff]  }
  0x79   :  { %2783 = vmatpush3.bf16.msra.mxu1 %v3067_v32  ;;  %2796 = vmatprep.subr.bf16.mxu0 %v3070_v35  ;;  %v340_v20 = vor.u32 %v339_v13, %v336_v12  ;;  %v348_v21 = vor.u32 %v347_v15, %v344_v14  ;;  %v331_v22 = vor.u32 %v330_v2, %v329_v63  ;;  %v189_v23 = vrot.slane %v140_v43, 1  ;;  %v3074_v32 = vld [vmem:[#allocation7 + $0x148] sm:$0xff]   ;;  %v3088_v60 = vld [vmem:[#allocation7 + $0x120] sm:$0xff]   ;;  %v3085_v63 = vld [vmem:[#allocation7 + $0x198] sm:$0xff]  }
  0x7a   :  { %2824 = vmatprep.subr.bf16.mxu1 %v3071_v36  ;;  %v370_v25 = vrot.slane %v368_v16, 2  ;;  %v373_v26 = vrot.slane %v371_v17, 3  ;;  %v382_v27 = vor.u32 %v381_v19, %v378_v18  ;;  %v234_v62 = vrot.slane %v3466_v38, 2  ;;  %v3089_v19 = vld [vmem:[#allocation7 + $0x1a0] sm:$0xff]   ;;  %v3489_v49 = vld [vmem:[#allocation2 + $0x8] sm:$0x1f] }
  0x7b   :  { %v349_v28 = vsel %vm240_vm2, %v340_v20, %v348_v21  ;;  %v332_v29 = vsel %vm240_vm2, %v328_v11, %v331_v22  ;;  %v190_v30 = vsel %vm187_vm3, %v188_v3, %v189_v23  ;;  %v359_v31 = vshrl.u32 %v189_v23, 16  ;;  %v3087_v3 = vld [vmem:[#allocation7 + $0x1e0] sm:$0xff]   ;;  %v3094_v11 = vld [vmem:[#allocation7 + $0x128] sm:$0xff]  }
  0x7c   :  { %1150 = vmatprep.mubr.bf16.mxu0 %v349_v28  ;;  %v374_v33 = vor.u32 %v373_v26, %v370_v25  ;;  %v351_v34 = vshrl.u32 %v190_v30, 16  ;;  %v354_v35 = vshll.u32 %v190_v30, 16  ;;  %v362_v36 = vshll.u32 %v189_v23, 16  ;;  %v3478_v1 = vld [vmem:[#allocation2 + $0x10] sm:$0xf8]  ;;  %v3096_v28 = vld [vmem:[#allocation7 + $0x170] sm:$0xff]  }
  0x7d   :  { %1151 = vmatmul.mubr.bf16.vlgmr.msra.gmra.mrb[0].mxu0 %v332_v29  ;;  %v361_v37 = vrot.slane %v359_v31, 2  ;;  %v137_v0 = vld [vmem:[#allocation2 + $0x18] sm:$0x7]  ;;  %v136_v2 = vld [vmem:[#allocation2 + $0x10] sm:$0xfc]  ;;  %v169_v4 = vshrl.u32 %v3478_v1, 16 }
  0x7e   :  { %v383_v40 = vsel %vm240_vm2, %v374_v33, %v382_v27  ;;  %v353_v41 = vrot.slane %v351_v34, 2  ;;  %v356_v42 = vrot.slane %v354_v35, 3  ;;  %v364_v43 = vrot.slane %v362_v36, 3  ;;  %2797 = vmatpush3.bf16.msra.mxu0 %v3072_v24  ;;  %v141_v8 = vld [vmem:[#allocation2 + $0x18] sm:$0xf] }
  0x7f   :  { %1199 = vmatprep.mubr.bf16.mxu1 %v383_v40  ;;  %2798 = vmatprep.subr.bf16.mxu0 %v3074_v32  ;;  %v171_v5 = vshll.u32 %v3478_v1, 16  ;;  %v176_v6 = vshll.u32 %v137_v0, 16  ;;  %v180_v7 = vshrl.u32 %v137_v0, 16  ;;  %v453_v9 = vshrl.u32 %v136_v2, 16  ;;  %v3482_v12 = vld [vmem:[#allocation2 + $0x10] sm:$0xf0] }
  0x80   :  { %v357_v46 = vor.u32 %v356_v42, %v353_v41  ;;  %v365_v47 = vor.u32 %v364_v43, %v361_v37  ;;  %v456_v10 = vshll.u32 %v136_v2, 16  ;;  %v221_v13 = vshrl.u32 %v141_v8, 16  ;;  %v3093_v29 = vld [vmem:[#allocation7 + $0x1e8] sm:$0xff]  }
  0x81   :  { %v224_v14 = vshll.u32 %v141_v8, 16  ;;  %v173_v15 = vrot.slane %v171_v5, 1  ;;  %v178_v16 = vrot.slane %v176_v6, 1  ;;  %v460_v17 = vrot.slane %v180_v7, 2 }
  0x82   :  { %v366_v51 = vsel %vm240_vm2, %v357_v46, %v365_v47  ;;  %2799 = vmatpush3.bf16.msra.mxu0 %v3076_v39  ;;  %v461_v18 = vrot.slane %v176_v6, 3  ;;  %v455_v20 = vrot.slane %v453_v9, 2  ;;  %v458_v21 = vrot.slane %v456_v10, 3  ;;  %v3098_v39 = vld [vmem:[#allocation7 + $0x130] sm:$0xff]  }
  0x83   :  { %1200 = vmatmul.mubr.bf16.vlgmr.msra.gmra.mrb[0].mxu1 %v366_v51  ;;  %2800 = vmatprep.subr.bf16.mxu0 %v3078_v45  ;;  %v213_v22 = vshrl.u32 %v3482_v12, 16  ;;  %v216_v23 = vshll.u32 %v3482_v12, 16  ;;  %v174_v24 = vor.u32 %v173_v15, %v169_v4  ;;  %v182_v25 = vor.u32 %v180_v7, %v178_v16  ;;  %v3495_v6 = vld [vmem:[#allocation2] sm:$0xe0] }
  0x84   :  { %2825 = vmatpush3.bf16.msra.mxu1 %v3073_v44  ;;  %v462_v26 = vor.u32 %v461_v18, %v460_v17  ;;  %v223_v27 = vrot.slane %v221_v13, 1  ;;  %v459_v30 = vor.u32 %v458_v21, %v455_v20  ;;  %v226_v33 = vrot.slane %v224_v14, 2  ;;  %v3498_v13 = vld [vmem:[#allocation2 + $0x8] sm:$0x3f]  ;;  %v150_v14 = vld [vmem:[#allocation2] sm:$0xc0] }
  0x85   :  { %2826 = vmatprep.subr.bf16.mxu1 %v3075_v48  ;;  %v215_v31 = vrot.slane %v213_v22, 1  ;;  %v218_v32 = vrot.slane %v216_v23, 2  ;;  %v179_v34 = vsel %vm152_vm0, %v174_v24, %v178_v16  ;;  %v473_v35 = vshrl.u32 %v182_v25, 16  ;;  %v3100_v48 = vld [vmem:[#allocation7 + $0x178] sm:$0xff]  }
  0x86   :  { %2801 = vmatpush3.bf16.msra.mxu0 %v3080_v52  ;;  %v476_v36 = vshll.u32 %v182_v25, 16  ;;  %v191_v37 = vrot.slane %v3478_v1, 1  ;;  %v465_v40 = vshrl.u32 %v179_v34, 16  ;;  %v468_v41 = vshll.u32 %v179_v34, 16  ;;  %v3095_v52 = vld [vmem:[#allocation7 + $0x1a8] sm:$0xff]   ;;  %v3102_v1 = vld [vmem:[#allocation7 + $0x138] sm:$0xff]  }
  0x87   :  { %2802 = vmatprep.subr.bf16.mxu0 %v3082_v53  ;;  %v463_v42 = vsel %vm240_vm2, %v459_v30, %v462_v26  ;;  %v219_v43 = vor.u32 %v218_v32, %v215_v31  ;;  %v475_v44 = vrot.slane %v473_v35, 2  ;;  %v227_v46 = vor.u32 %v226_v33, %v223_v27 }
  0x88   :  { %2827 = vmatpush3.bf16.msra.mxu1 %v3077_v54  ;;  %v478_v45 = vrot.slane %v476_v36, 3  ;;  %v192_v47 = vrot.slane %v141_v8, 1  ;;  %v467_v50 = vrot.slane %v465_v40, 2  ;;  %v470_v51 = vrot.slane %v468_v41, 3 }
  0x89   :  { %2828 = vmatprep.subr.bf16.mxu1 %v3079_v55  ;;  %v250_v53 = vshrl.u32 %v3489_v49, 16  ;;  %v253_v54 = vshll.u32 %v3489_v49, 16  ;;  %v242_v22 = vshrl.u32 %v3495_v6, 16  ;;  %v245_v23 = vshll.u32 %v3495_v6, 16 }
  0x8a   :  { %2803 = vmatpush3.bf16.msra.mxu0 %v3084_v57  ;;  %v479_v55 = vor.u32 %v478_v45, %v475_v44  ;;  %v507_v57 = vshrl.u32 %v227_v46, 16  ;;  %v193_v0 = vsel %vm187_vm3, %v191_v37, %v192_v47  ;;  %v490_v10 = vshrl.u32 %v192_v47, 16 }
  0x8b   :  { %2804 = vmatprep.subr.bf16.mxu0 %v3086_v59  ;;  %v3097_v59 = vld [vmem:[#allocation7 + $0x1f0] sm:$0xff]   ;;  %v482_v4 = vshrl.u32 %v193_v0, 16  ;;  %v485_v5 = vshll.u32 %v193_v0, 16  ;;  %v493_v18 = vshll.u32 %v192_v47, 16  ;;  %v252_v26 = vrot.slane %v250_v53, 2 }
  0x8c   :  { %2829 = vmatpush3.bf16.msra.mxu1 %v3081_v56  ;;  %v228_v56 = vsel %vm194_vm1, %v219_v43, %v227_v46  ;;  %v509_v2 = vrot.slane %v507_v57, 2  ;;  %v492_v21 = vrot.slane %v490_v10, 2  ;;  %v255_v27 = vrot.slane %v253_v54, 3 }
  0x8d   :  { %2830 = vmatprep.subr.bf16.mxu1 %v3083_v58  ;;  %v510_v58 = vshll.u32 %v227_v46, 16  ;;  %v484_v16 = vrot.slane %v482_v4, 2  ;;  %v487_v17 = vrot.slane %v485_v5, 3  ;;  %v495_v25 = vrot.slane %v493_v18, 3 }
  0x8e   :  { %2805 = vmatpush3.bf16.msra.mxu0 %v3088_v60  ;;  %v471_v60 = vor.u32 %v470_v51, %v467_v50  ;;  %v244_v30 = vrot.slane %v242_v22, 2  ;;  %v247_v31 = vrot.slane %v245_v23, 3  ;;  %v288_v32 = vshrl.u32 %v150_v14, 16 }
  0x8f   :  { %2806 = vmatprep.subr.bf16.mxu0 %v3092_v61  ;;  %v499_v61 = vshrl.u32 %v228_v56, 16  ;;  %v488_v24 = vor.u32 %v487_v17, %v484_v16  ;;  %v496_v33 = vor.u32 %v495_v25, %v492_v21  ;;  %v256_v34 = vor.u32 %v255_v27, %v252_v26 }
  0x90   :  { %2831 = vmatpush3.bf16.msra.mxu1 %v3085_v63  ;;  %v502_v63 = vshll.u32 %v228_v56, 16  ;;  %v480_v7 = vsel %vm240_vm2, %v471_v60, %v479_v55  ;;  %v291_v35 = vshll.u32 %v150_v14, 16  ;;  %v296_v36 = vshrl.u32 %v3498_v13, 16 }
  0x91   :  { %2832 = vmatprep.subr.bf16.mxu1 %v3087_v3  ;;  %v512_v3 = vrot.slane %v510_v58, 3  ;;  %v501_v8 = vrot.slane %v499_v61, 2  ;;  %1158 = vmatprep.mubr.bf16.mxu0 %v480_v7  ;;  %v248_v37 = vor.u32 %v247_v31, %v244_v30  ;;  %v299_v40 = vshll.u32 %v3498_v13, 16  ;;  %v151_v30 = vld [vmem:[#allocation2 + $0x10] sm:$0xc0] }
  0x92   :  { %2807 = vmatpush3.bf16.msra.mxu0 %v3094_v11  ;;  %v504_v9 = vrot.slane %v502_v63, 3  ;;  %v3099_v11 = vld [vmem:[#allocation7 + $0x1b0] sm:$0xff]   ;;  %v235_v41 = vrot.slane %v3489_v49, 2  ;;  %v410_v43 = vshrl.u32 %v256_v34, 16  ;;  %v413_v44 = vshll.u32 %v256_v34, 16 }
  0x93   :  { %2808 = vmatprep.subr.bf16.mxu0 %v3096_v28  ;;  %v513_v15 = vor.u32 %v512_v3, %v509_v2  ;;  %1159 = vmatmul.mubr.bf16.gmra.mrb[4].mxu0 %v463_v42  ;;  %v497_v42 = vsel %vm240_vm2, %v488_v24, %v496_v33  ;;  %v293_v45 = vrot.slane %v291_v35, 4  ;;  %v257_v46 = vsel %vm240_vm2, %v248_v37, %v256_v34  ;;  %v145_v2 = vld [vmem:[#allocation2 + $0x18] sm:$0x1f] }
  0x94   :  { %2833 = vmatpush3.bf16.msra.mxu1 %v3089_v19  ;;  %v3101_v19 = vld [vmem:[#allocation7 + $0x1f8] sm:$0xff]   ;;  %v505_v20 = vor.u32 %v504_v9, %v501_v8  ;;  %v298_v47 = vrot.slane %v296_v36, 3  ;;  %v236_v50 = vsel %vm233_vm4, %v234_v62, %v235_v41  ;;  %v402_v51 = vshrl.u32 %v257_v46, 16  ;;  %v3512_v62 = vld [vmem:[#allocation2 + $0x10] sm:$0xe0] }
  0x95   :  { %2834 = vmatprep.subr.bf16.mxu1 %v3093_v29  ;;  %v3103_v29 = vld [vmem:[#allocation7 + $0x1b8] sm:$0xff]   ;;  %v412_v53 = vrot.slane %v410_v43, 2  ;;  %v415_v49 = vrot.slane %v413_v44, 3  ;;  %v385_v56 = vshrl.u32 %v236_v50, 16  ;;  %v388_v57 = vshll.u32 %v236_v50, 16 }
  0x96   :  { %2809 = vmatpush3.bf16.msra.mxu0 %v3098_v39  ;;  %v514_v28 = vsel %vm240_vm2, %v505_v20, %v513_v15  ;;  %v290_v39 = vrot.slane %v288_v32, 3  ;;  %v404_v58 = vrot.slane %v402_v51, 2  ;;  %v393_v61 = vshrl.u32 %v235_v41, 16 }
  0x97   :  { %2810 = vmatprep.subr.bf16.mxu0 %v3100_v48  ;;  %1207 = vmatprep.mubr.bf16.mxu1 %v514_v28  ;;  %v301_v48 = vrot.slane %v299_v40, 4  ;;  %v416_v60 = vor.u32 %v415_v49, %v412_v53  ;;  %v387_v38 = vrot.slane %v385_v56, 2  ;;  %v390_v7 = vrot.slane %v388_v57, 3 }
  0x98   :  { %2835 = vmatpush3.bf16.msra.mxu1 %v3095_v52  ;;  %v405_v52 = vshll.u32 %v257_v46, 16  ;;  %v294_v54 = vor.u32 %v293_v45, %v290_v39  ;;  %v395_v10 = vrot.slane %v393_v61, 2  ;;  %v280_v20 = vrot.slane %v3495_v6, 3  ;;  %v149_v6 = vld [vmem:[#allocation2 + $0x18] sm:$0x3f] }
  0x99   :  { %2836 = vmatprep.subr.bf16.mxu1 %v3097_v59  ;;  %1208 = vmatmul.mubr.bf16.gmra.mrb[4].mxu1 %v497_v42  ;;  %v302_v55 = vor.u32 %v301_v48, %v298_v47  ;;  %v391_v17 = vor.u32 %v390_v7, %v387_v38  ;;  %v281_v21 = vrot.slane %v3498_v13, 3  ;;  %v259_v23 = vshrl.u32 %v3512_v62, 16 }
  0x9a   :  { %2811 = vmatpush3.bf16.msra.mxu0 %v3102_v1  ;;  %v407_v59 = vrot.slane %v405_v52, 3  ;;  %v262_v24 = vshll.u32 %v3512_v62, 16  ;;  %v267_v25 = vshrl.u32 %v145_v2, 16  ;;  %v270_v42 = vshll.u32 %v145_v2, 16 }
  0x9b   :  { %v303_v63 = vsel %vm286_vm5, %v294_v54, %v302_v55  ;;  %v444_v0 = vshrl.u32 %v302_v55, 16  ;;  %v447_v1 = vshll.u32 %v302_v55, 16  ;;  %v282_v27 = vsel %vm279_vm6, %v280_v20, %v281_v21 }
  0x9c   :  { %2837 = vmatpush3.bf16.msra.mxu1 %v3099_v11  ;;  %v408_v3 = vor.u32 %v407_v59, %v404_v58  ;;  %v436_v4 = vshrl.u32 %v303_v63, 16  ;;  %v439_v5 = vshll.u32 %v303_v63, 16  ;;  %v396_v11 = vshll.u32 %v235_v41, 16 }
  0x9d   :  { %2838 = vmatprep.subr.bf16.mxu1 %v3101_v19  ;;  %v446_v8 = vrot.slane %v444_v0, 2  ;;  %v449_v9 = vrot.slane %v447_v1, 3  ;;  %v427_v28 = vshrl.u32 %v281_v21, 16  ;;  %v419_v32 = vshrl.u32 %v282_v27, 16 }
  0x9e   :  { %v417_v14 = vsel %vm240_vm2, %v408_v3, %v416_v60  ;;  %v438_v15 = vrot.slane %v436_v4, 2  ;;  %v441_v16 = vrot.slane %v439_v5, 3  ;;  %v398_v19 = vrot.slane %v396_v11, 3 }
  0x9f   :  { %1248 = vmatprep.mubr.bf16.mxu0 %v417_v14  ;;  %v450_v18 = vor.u32 %v449_v9, %v446_v8  ;;  %v422_v33 = vshll.u32 %v282_v27, 16  ;;  %v261_v34 = vrot.slane %v259_v23, 2  ;;  %v429_v35 = vrot.slane %v427_v28, 2 }
  0xa0   :  { %2839 = vmatpush3.bf16.msra.mxu1 %v3103_v29  ;;  %v442_v22 = vor.u32 %v441_v16, %v438_v15  ;;  %v399_v26 = vor.u32 %v398_v19, %v395_v10  ;;  %v430_v29 = vshll.u32 %v281_v21, 16  ;;  %v264_v37 = vrot.slane %v262_v24, 3 }
  0xa1   :  { %v421_v39 = vrot.slane %v419_v32, 2  ;;  %v424_v40 = vrot.slane %v422_v33, 3  ;;  %v269_v41 = vrot.slane %v267_v25, 2  ;;  %v237_v45 = vrot.slane %v3482_v12, 2 }
  0xa2   :  { %v451_v31 = vsel %vm240_vm2, %v442_v22, %v450_v18  ;;  %v400_v13 = vsel %vm240_vm2, %v391_v17, %v399_v26  ;;  %v432_v36 = vrot.slane %v430_v29, 3  ;;  %v265_v44 = vor.u32 %v264_v37, %v261_v34 }
  0xa3   :  { %1297 = vmatprep.mubr.bf16.mxu1 %v451_v31  ;;  %1249 = vmatmul.mubr.bf16.vlgmr.msra.gmra.mrb[8].mxu0 %v400_v13  ;;  %v238_v46 = vrot.slane %v145_v2, 2  ;;  %v425_v47 = vor.u32 %v424_v40, %v421_v39  ;;  %v272_v48 = vrot.slane %v270_v42, 3  ;;  %v305_v50 = vshrl.u32 %v151_v30, 16 }
  0xa4   :  { %v433_v43 = vor.u32 %v432_v36, %v429_v35  ;;  %v308_v51 = vshll.u32 %v151_v30, 16  ;;  %v313_v54 = vshrl.u32 %v149_v6, 16  ;;  %v316_v15 = vshll.u32 %v149_v6, 16 }
  0xa5   :  { %v239_v52 = vsel %vm233_vm4, %v237_v45, %v238_v46  ;;  %v524_v53 = vshrl.u32 %v238_v46, 16  ;;  %v527_v49 = vshll.u32 %v238_v46, 16  ;;  %v273_v56 = vor.u32 %v272_v48, %v269_v41  ;;  %v3105_v48 = vld [vmem:[#allocation9] sm:$0xff]  }
  0xa6   :  { %v434_v55 = vsel %vm240_vm2, %v425_v47, %v433_v43  ;;  %v516_v57 = vshrl.u32 %v239_v52, 16  ;;  %v519_v58 = vshll.u32 %v239_v52, 16  ;;  %v307_v61 = vrot.slane %v305_v50, 3  ;;  %v3104_v47 = vld [vmem:[#allocation9 + $0x40] sm:$0xff]   ;;  %v3108_v52 = vld [vmem:[#allocation9 + $0x48] sm:$0xff]  }
  0xa7   :  { %1298 = vmatmul.mubr.bf16.vlgmr.msra.gmra.mrb[8].mxu1 %v434_v55  ;;  %v526_v59 = vrot.slane %v524_v53, 2  ;;  %v529_v60 = vrot.slane %v527_v49, 3  ;;  %v274_v12 = vsel %vm240_vm2, %v265_v44, %v273_v56  ;;  %v541_v63 = vshrl.u32 %v273_v56, 16  ;;  %2852 = vmatprep.subr.bf16.mxu0 %v3104_v47  ;;  %v3106_v50 = vld [vmem:[#allocation9 + $0xc0] sm:$0xff]   ;;  %v3109_v53 = vld [vmem:[#allocation9 + $0x8] sm:$0xff]   ;;  %v3112_v55 = vld [vmem:[#allocation9 + $0x50] sm:$0xff]  }
  0xa8   :  { %v544_v0 = vshll.u32 %v273_v56, 16  ;;  %v518_v1 = vrot.slane %v516_v57, 2  ;;  %v533_v38 = vshrl.u32 %v274_v12, 16  ;;  %v536_v2 = vshll.u32 %v274_v12, 16  ;;  %2853 = vmatpush3.bf16.msra.mxu0 %v3105_v48  ;;  %2880 = vmatprep.subr.bf16.mxu1 %v3106_v50  ;;  %v3110_v49 = vld [vmem:[#allocation9 + $0xc8] sm:$0xff]   ;;  %v3113_v56 = vld [vmem:[#allocation9 + $0x10] sm:$0xff]  }
  0xa9   :  { %v521_v3 = vrot.slane %v519_v58, 3  ;;  %v310_v4 = vrot.slane %v308_v51, 4  ;;  %v543_v5 = vrot.slane %v541_v63, 2  ;;  %v530_v8 = vor.u32 %v529_v60, %v526_v59  ;;  %v3107_v51 = vld [vmem:[#allocation9 + $0x80] sm:$0xff]   ;;  %2854 = vmatprep.subr.bf16.mxu0 %v3108_v52  ;;  %v3114_v57 = vld [vmem:[#allocation9 + $0xd0] sm:$0xff]   ;;  %v3116_v59 = vld [vmem:[#allocation9 + $0x58] sm:$0xff]  }
  0xaa   :  { %v546_v7 = vrot.slane %v544_v0, 3  ;;  %v315_v9 = vrot.slane %v313_v54, 3  ;;  %v535_v10 = vrot.slane %v533_v38, 2  ;;  %v538_v11 = vrot.slane %v536_v2, 3  ;;  %2881 = vmatpush3.bf16.msra.mxu1 %v3107_v51  ;;  %v3111_v54 = vld [vmem:[#allocation9 + $0x88] sm:$0xff]   ;;  %v3115_v58 = vld [vmem:[#allocation9 + $0x90] sm:$0xff]  }
  0xab   :  { %v522_v14 = vor.u32 %v521_v3, %v518_v1  ;;  %v283_v17 = vrot.slane %v3512_v62, 3  ;;  %v284_v18 = vrot.slane %v149_v6, 3  ;;  %v311_v20 = vor.u32 %v310_v4, %v307_v61  ;;  %2882 = vmatprep.subr.bf16.mxu1 %v3110_v49  ;;  %v3117_v60 = vld [vmem:[#allocation9 + $0x18] sm:$0xff]   ;;  %v3120_v63 = vld [vmem:[#allocation9 + $0x60] sm:$0xff]   ;;  %v3124_v2 = vld [vmem:[#allocation9 + $0x68] sm:$0xff]  }
  0xac   :  { %v547_v16 = vor.u32 %v546_v7, %v543_v5  ;;  %v539_v19 = vor.u32 %v538_v11, %v535_v10  ;;  %v318_v21 = vrot.slane %v316_v15, 4  ;;  %2855 = vmatpush3.bf16.msra.mxu0 %v3109_v53  ;;  %v3118_v61 = vld [vmem:[#allocation9 + $0xd8] sm:$0xff]   ;;  %v3121_v0 = vld [vmem:[#allocation9 + $0x20] sm:$0xff]   ;;  %v3125_v3 = vld [vmem:[#allocation9 + $0x28] sm:$0xff]  }
  0xad   :  { %v531_v22 = vsel %vm240_vm2, %v522_v14, %v530_v8  ;;  %v285_v23 = vsel %vm279_vm6, %v283_v17, %v284_v18  ;;  %v558_v24 = vshrl.u32 %v284_v18, 16  ;;  %v561_v25 = vshll.u32 %v284_v18, 16  ;;  %2856 = vmatprep.subr.bf16.mxu0 %v3112_v55  ;;  %v3119_v12 = vld [vmem:[#allocation9 + $0x98] sm:$0xff]   ;;  %v3122_v1 = vld [vmem:[#allocation9 + $0xe0] sm:$0xff]   ;;  %v3126_v4 = vld [vmem:[#allocation9 + $0xe8] sm:$0xff]  }
  0xae   :  { %v548_v26 = vsel %vm240_vm2, %v539_v19, %v547_v16  ;;  %v319_v27 = vor.u32 %v318_v21, %v315_v9  ;;  %v550_v28 = vshrl.u32 %v285_v23, 16  ;;  %v553_v29 = vshll.u32 %v285_v23, 16  ;;  %2883 = vmatpush3.bf16.msra.mxu1 %v3111_v54  ;;  %v3123_v38 = vld [vmem:[#allocation9 + $0xa0] sm:$0xff]   ;;  %v3127_v5 = vld [vmem:[#allocation9 + $0xa8] sm:$0xff]   ;;  %v3128_v7 = vld [vmem:[#allocation9 + $0x70] sm:$0xff]  }
  0xaf   :  { %1256 = vmatprep.mubr.bf16.mxu0 %v548_v26  ;;  %v560_v30 = vrot.slane %v558_v24, 2  ;;  %v563_v31 = vrot.slane %v561_v25, 3  ;;  %2884 = vmatprep.subr.bf16.mxu1 %v3114_v57  ;;  %v3129_v8 = vld [vmem:[#allocation9 + $0x30] sm:$0xff]   ;;  %v3132_v11 = vld [vmem:[#allocation9 + $0x78] sm:$0xff]   ;;  %v3533_v17 = vld [vmem:[#allocation9 + $0x100] sm:$0xff]  }
  0xb0   :  { %1257 = vmatmul.mubr.bf16.gmra.mrb[12].mxu0 %v531_v22  ;;  %v320_v62 = vsel %vm286_vm5, %v311_v20, %v319_v27  ;;  %v575_v32 = vshrl.u32 %v319_v27, 16  ;;  %v578_v33 = vshll.u32 %v319_v27, 16  ;;  %v552_v34 = vrot.slane %v550_v28, 2  ;;  %v3130_v9 = vld [vmem:[#allocation9 + $0xf0] sm:$0xff]   ;;  %v3134_v14 = vld [vmem:[#allocation9 + $0xf8] sm:$0xff]  }
  0xb1   :  { %v567_v6 = vshrl.u32 %v320_v62, 16  ;;  %v570_v13 = vshll.u32 %v320_v62, 16  ;;  %v555_v35 = vrot.slane %v553_v29, 3  ;;  %v564_v39 = vor.u32 %v563_v31, %v560_v30  ;;  %2857 = vmatpush3.bf16.msra.mxu0 %v3113_v56  ;;  %v3131_v10 = vld [vmem:[#allocation9 + $0xb0] sm:$0xff]   ;;  %v3133_v15 = vld [vmem:[#allocation9 + $0x38] sm:$0xff]  }
  0xb2   :  { %v577_v36 = vrot.slane %v575_v32, 2  ;;  %v580_v37 = vrot.slane %v578_v33, 3  ;;  %2885 = vmatpush3.bf16.msra.mxu1 %v3115_v58  ;;  %2858 = vmatprep.subr.bf16.mxu0 %v3116_v59  ;;  %v3135_v16 = vld [vmem:[#allocation9 + $0xb8] sm:$0xff]   ;;  %v2600_v22 = vld [vmem:[%s3606_s2] ss:$0 sm:$0xff] }
  0xb3   :  { %v569_v40 = vrot.slane %v567_v6, 2  ;;  %v572_v41 = vrot.slane %v570_v13, 3  ;;  %v556_v42 = vor.u32 %v555_v35, %v552_v34  ;;  %2886 = vmatprep.subr.bf16.mxu1 %v3118_v61 }
  0xb4   :  { %v581_v43 = vor.u32 %v580_v37, %v577_v36 }
  0xb5   :  { %v573_v44 = vor.u32 %v572_v41, %v569_v40  ;;  %v565_v45 = vsel %vm240_vm2, %v556_v42, %v564_v39  ;;  %2859 = vmatpush3.bf16.msra.mxu0 %v3117_v60 }
  0xb6   :  { %2887 = vmatpush3.bf16.msra.mxu1 %v3119_v12  ;;  %2860 = vmatprep.subr.bf16.mxu0 %v3120_v63 }
  0xb7   :  { %v582_v46 = vsel %vm240_vm2, %v573_v44, %v581_v43  ;;  %2888 = vmatprep.subr.bf16.mxu1 %v3122_v1 }
  0xb8   :  { %1305 = vmatprep.mubr.bf16.mxu1 %v582_v46 }
  0xb9   :  { %1306 = vmatmul.mubr.bf16.gmra.mrb[12].mxu1 %v565_v45  ;;  %2861 = vmatpush3.bf16.msra.mxu0 %v3121_v0 }
  0xba   :  { %2889 = vmatpush3.bf16.msra.mxu1 %v3123_v38  ;;  %2862 = vmatprep.subr.bf16.mxu0 %v3124_v2 }
  0xbb   :  { %2890 = vmatprep.subr.bf16.mxu1 %v3126_v4 }
  0xbd   :  { %2863 = vmatpush3.bf16.msra.mxu0 %v3125_v3 }
  0xbe   :  { %2891 = vmatpush3.bf16.msra.mxu1 %v3127_v5  ;;  %2864 = vmatprep.subr.bf16.mxu0 %v3128_v7 }
  0xbf   :  { %2892 = vmatprep.subr.bf16.mxu1 %v3130_v9 }
  0xc1   :  { %2865 = vmatpush3.bf16.msra.mxu0 %v3129_v8 }
  0xc2   :  { %2893 = vmatpush3.bf16.msra.mxu1 %v3131_v10  ;;  %2866 = vmatprep.subr.bf16.mxu0 %v3132_v11 }
  0xc3   :  { %2894 = vmatprep.subr.bf16.mxu1 %v3134_v14 }
  0xc5   :  { %2867 = vmatpush3.bf16.msra.mxu0 %v3133_v15 }
  0xc6   :  { %2895 = vmatpush3.bf16.msra.mxu1 %v3135_v16  ;;  %2965 = vmatprep.subr.bf16.mxu0 %v3533_v17 }
 0x150   :  { %v2756_v18 = vpop.f32.mrb[0].mxu0 }
 0x151   :  { %v2757_v19 = vpop.f32.mrb[1].mxu0 }
 0x152   :  { %v2758_v20 = vadd.f32 %v2757_v19, %v2756_v18  ;;  %v2759_v21 = vpop.f32.mrb[2].mxu0 }
 0x153   :  { %v2760_v23 = vpop.f32.mrb[3].mxu0 }
 0x154   :  { %v2761_v24 = vadd.f32 %v2760_v23, %v2759_v21  ;;  %v1153_v26 = vadd.f32 %v2758_v20, %v2600_v22 }
 0x156   :  { %v2784_v25 = vpop.f32.mrb[0].mxu1  ;;  %v1156_v30 = vadd.f32 %v2761_v24, %v2600_v22 }
 0x157   :  { %v2785_v27 = vpop.f32.mrb[1].mxu1 }
 0x158   :  { %v2786_v28 = vadd.f32 %v2785_v27, %v2784_v25  ;;  %v2787_v29 = vpop.f32.mrb[2].mxu1 }
 0x159   :  { %v2788_v31 = vpop.f32.mrb[3].mxu1 }
 0x15a   :  { %v1202_v62 = vadd.f32 %v2786_v28, %v1153_v26  ;;  %v2789_v32 = vadd.f32 %v2788_v31, %v2787_v29 }
 0x15c   :  { %v1205_v33 = vadd.f32 %v2789_v32, %v1156_v30 }
 0x166   :  { %v2762_v34 = vpop.f32.mrb[4].mxu0 }
 0x167   :  { %v2763_v6 = vpop.f32.mrb[5].mxu0 }
 0x168   :  { %v2764_v13 = vadd.f32 %v2763_v6, %v2762_v34  ;;  %v2765_v35 = vpop.f32.mrb[6].mxu0 }
 0x169   :  { %v2766_v36 = vpop.f32.mrb[7].mxu0 }
 0x16a   :  { %v2767_v37 = vadd.f32 %v2766_v36, %v2765_v35  ;;  %v1161_v39 = vadd.f32 %v2764_v13, %v2600_v22 }
 0x16c   :  { %v2790_v40 = vpop.f32.mrb[4].mxu1  ;;  %v1164_v42 = vadd.f32 %v2767_v37, %v2600_v22 }
 0x16d   :  { %v2791_v41 = vpop.f32.mrb[5].mxu1 }
 0x16e   :  { %v2792_v43 = vadd.f32 %v2791_v41, %v2790_v40  ;;  %v2793_v44 = vpop.f32.mrb[6].mxu1 }
 0x16f   :  { %v2794_v45 = vpop.f32.mrb[7].mxu1 }
 0x170   :  { %v1210_v46 = vadd.f32 %v2792_v43, %v1161_v39  ;;  %v2795_v47 = vadd.f32 %v2794_v45, %v2793_v44 }
 0x172   :  { %v1213_v48 = vadd.f32 %v2795_v47, %v1164_v42 }
 0x176   :  { %v2812_v50 = vpop.f32.mrb[8].mxu0 }
 0x177   :  { %v2813_v51 = vpop.f32.mrb[9].mxu0 }
 0x178   :  { %v2814_v52 = vadd.f32 %v2813_v51, %v2812_v50  ;;  %v2815_v53 = vpop.f32.mrb[10].mxu0 }
 0x179   :  { %v2816_v49 = vpop.f32.mrb[11].mxu0 }
 0x17a   :  { %v1251_v54 = vadd.f32 %v2814_v52, %v1202_v62  ;;  %v2817_v55 = vadd.f32 %v2816_v49, %v2815_v53  ;;  %v2840_v56 = vpop.f32.mrb[8].mxu1 }
 0x17b   :  { %v2841_v57 = vpop.f32.mrb[9].mxu1 }
 0x17c   :  { %v1254_v58 = vadd.f32 %v2817_v55, %v1205_v33  ;;  %v2842_v59 = vadd.f32 %v2841_v57, %v2840_v56  ;;  %v2843_v60 = vpop.f32.mrb[10].mxu1 }
 0x17d   :  { %v2844_v61 = vpop.f32.mrb[11].mxu1 }
 0x17e   :  { %v1300_v12 = vadd.f32 %v2842_v59, %v1251_v54  ;;  %v2845_v63 = vadd.f32 %v2844_v61, %v2843_v60  ;;  %v3137_v59 = vld [vmem:[#allocation9 + $0x108] sm:$0xff]  }
 0x180   :  { %v1303_v0 = vadd.f32 %v2845_v63, %v1254_v58  ;;  %v1314_v1 = vmax.f32 %v1300_v12, 0.0 }
 0x182   :  { %v1315_v38 = vmax.f32 %v1303_v0, 0.0 }
 0x183   :  { %v2818_v3 = vpop.f32.mrb[12].mxu0 }
 0x184   :  { %v1318_v2 = vpack.c.bf16 %v1315_v38, %v1314_v1  ;;  %v2819_v4 = vpop.f32.mrb[13].mxu0 }
 0x185   :  { %v2820_v7 = vadd.f32 %v2819_v4, %v2818_v3  ;;  %v2821_v8 = vpop.f32.mrb[14].mxu0  ;;  %v3138_v3 = vld [vmem:[#allocation9 + $0x110] sm:$0xff]  }
 0x186   :  { %v1322_v5 = vrot.slane %v1318_v2, 4  ;;  %v2822_v9 = vpop.f32.mrb[15].mxu0 }
 0x187   :  { %v1259_v10 = vadd.f32 %v2820_v7, %v1210_v46  ;;  %v2823_v11 = vadd.f32 %v2822_v9, %v2821_v8  ;;  %v3139_v7 = vld [vmem:[#allocation9 + $0x118] sm:$0xff]  }
 0x188   :  { %1326 = vst [vmem:[#allocation3 + $0x8] ss:$-4 sps:$4 sm:$0xff] %v1322_v5  }
 0x189   :  { %v1262_v14 = vadd.f32 %v2823_v11, %v1213_v48 }
 0x18c   :  { %v2846_v15 = vpop.f32.mrb[12].mxu1 }
 0x18d   :  { %v2847_v16 = vpop.f32.mrb[13].mxu1 }
 0x18e   :  { %v2848_v18 = vadd.f32 %v2847_v16, %v2846_v15  ;;  %v2849_v19 = vpop.f32.mrb[14].mxu1 }
 0x18f   :  { %v1330_v20 = vld [vmem:[#allocation3] sm:$0xf8]  ;;  %v1334_v21 = vld [vmem:[#allocation3 + $0x8] sm:$0xf]  ;;  %v2850_v22 = vpop.f32.mrb[15].mxu1 }
 0x190   :  { %v1345_v23 = vshll.u32 %v1330_v20, 16  ;;  %v1350_v24 = vshll.u32 %v1334_v21, 16  ;;  %v1308_v25 = vadd.f32 %v2848_v18, %v1259_v10  ;;  %v2851_v26 = vadd.f32 %v2850_v22, %v2849_v19  ;;  %v1336_v29 = vld [vmem:[#allocation3] sm:$0xf0]  ;;  %v3539_v30 = vld [vmem:[#allocation3 + $0x8] sm:$0x1f] }
 0x191   :  { %v1343_v27 = vshrl.u32 %v1330_v20, 16  ;;  %v1354_v28 = vshrl.u32 %v1334_v21, 16  ;;  %v1383_v32 = vshrl.u32 %v1336_v29, 16  ;;  %v1386_v33 = vshll.u32 %v1336_v29, 16  ;;  %v1331_v36 = vld [vmem:[#allocation3 + $0x8] sm:$0x7] }
 0x192   :  { %v1347_v31 = vrot.slane %v1345_v23, 1  ;;  %v1352_v62 = vrot.slane %v1350_v24, 1  ;;  %v1316_v34 = vmax.f32 %v1308_v25, 0.0  ;;  %v1311_v6 = vadd.f32 %v2851_v26, %v1262_v14  ;;  %v1340_v38 = vld [vmem:[#allocation3] sm:$0xe0]  ;;  %v3140_v25 = vld [vmem:[#allocation9 + $0x120] sm:$0xff]  }
 0x193   :  { %v1391_v13 = vshrl.u32 %v3539_v30, 16  ;;  %v1394_v35 = vshll.u32 %v3539_v30, 16  ;;  %v1385_v40 = vrot.slane %v1383_v32, 1  ;;  %v1388_v41 = vrot.slane %v1386_v33, 2 }
 0x194   :  { %v1348_v37 = vor.u32 %v1347_v31, %v1343_v27  ;;  %v1356_v39 = vor.u32 %v1354_v28, %v1352_v62  ;;  %v1317_v42 = vmax.f32 %v1311_v6, 0.0  ;;  %v1430_v45 = vrot.slane %v1330_v20, 3 }
 0x195   :  { %v1393_v43 = vrot.slane %v1391_v13, 1  ;;  %v1396_v44 = vrot.slane %v1394_v35, 2  ;;  %v1389_v48 = vor.u32 %v1388_v41, %v1385_v40  ;;  %v1431_v50 = vrot.slane %v1331_v36, 3  ;;  %v3141_v41 = vld [vmem:[#allocation9 + $0x128] sm:$0xff]  }
 0x196   :  { %v1353_v46 = vsel %vm152_vm0, %v1348_v37, %v1352_v62  ;;  %v1434_v47 = vrot.slane %v1356_v39, 3  ;;  %v1319_v51 = vpack.c.bf16 %v1317_v42, %v1316_v34  ;;  %v1376_v49 = vrot.slane %v1336_v29, 1 }
 0x197   :  { %v1433_v52 = vrot.slane %v1353_v46, 3  ;;  %v1397_v53 = vor.u32 %v1396_v44, %v1393_v43  ;;  %v1377_v54 = vrot.slane %v1334_v21, 1  ;;  %v1432_v61 = vsel %vm279_vm6, %v1430_v45, %v1431_v50 }
 0x198   :  { %v1323_v55 = vrot.slane %v1319_v51, 4  ;;  %v1420_v4 = vrot.slane %v1340_v38, 2  ;;  %v1421_v5 = vrot.slane %v3539_v30, 2  ;;  %v3147_v38 = vld [vmem:[#allocation10] sm:$0xff]  }
 0x199   :  { %v1435_v56 = vsel %vm279_vm6, %v1433_v52, %v1434_v47  ;;  %v1398_v57 = vsel %vm194_vm1, %v1389_v48, %v1397_v53  ;;  %v1440_v58 = vrot.slane %v1397_v53, 3  ;;  %v1378_v12 = vsel %vm187_vm3, %v1376_v49, %v1377_v54  ;;  %v3142_v49 = vld [vmem:[#allocation9 + $0x130] sm:$0xff]  }
 0x19a   :  { %1829 = vmatprep.mubr.bf16.mxu0 %v1435_v56  ;;  %v1439_v60 = vrot.slane %v1398_v57, 3  ;;  %v1437_v63 = vrot.slane %v1377_v54, 3  ;;  %1328 = vst [vmem:[#allocation3 + $0x18] ss:$-4 sps:$4 sm:$0xff] %v1323_v55   ;;  %v1436_v0 = vrot.slane %v1378_v12, 3  ;;  %v1443_v35 = vrot.slane %v1421_v5, 3 }
 0x19b   :  { %1830 = vmatmul.mubr.bf16.vlgmr.msra.gmra.mrb[16].mxu0 %v1432_v61 }
 0x19c   :  { %v1441_v1 = vsel %vm279_vm6, %v1439_v60, %v1440_v58  ;;  %2966 = vmatpush3.bf16.msra.mxu0 %v3533_v17  ;;  %v1438_v2 = vsel %vm279_vm6, %v1436_v0, %v1437_v63  ;;  %v1422_v17 = vsel %vm233_vm4, %v1420_v4, %v1421_v5  ;;  %v3143_v58 = vld [vmem:[#allocation9 + $0x138] sm:$0xff]   ;;  %v3144_v63 = vld [vmem:[#allocation10 + $0x80] sm:$0xff]   ;;  %v3150_v4 = vld [vmem:[#allocation10 + $0x8] sm:$0xff]  }
 0x19d   :  { %1878 = vmatprep.mubr.bf16.mxu1 %v1441_v1  ;;  %2967 = vmatprep.subr.bf16.mxu0 %v3137_v59  ;;  %v1442_v33 = vrot.slane %v1422_v17, 3  ;;  %v3145_v0 = vld [vmem:[#allocation10 + $0x40] sm:$0xff]   ;;  %v3146_v1 = vld [vmem:[#allocation10 + $0x88] sm:$0xff]   ;;  %v3151_v5 = vld [vmem:[#allocation10 + $0x50] sm:$0xff]  }
 0x19e   :  { %1879 = vmatmul.mubr.bf16.vlgmr.msra.gmra.mrb[16].mxu1 %v1438_v2  ;;  %v3148_v2 = vld [vmem:[#allocation10 + $0x48] sm:$0xff]   ;;  %2918 = vmatprep.subr.bf16.mxu1 %v3145_v0  ;;  %v3159_v17 = vld [vmem:[#allocation10 + $0x20] sm:$0xff]  }
 0x19f   :  { %v1444_v55 = vsel %vm279_vm6, %v1442_v33, %v1443_v35  ;;  %2919 = vmatpush3.bf16.msra.mxu1 %v3147_v38 }
 0x1a0   :  { %2968 = vmatpush3.bf16.msra.mxu0 %v3137_v59  ;;  %2920 = vmatprep.subr.bf16.mxu1 %v3148_v2 }
 0x1a1   :  { %2969 = vmatprep.subr.bf16.mxu0 %v3138_v3  ;;  %v1332_v8 = vld [vmem:[#allocation3 + $0x10] sm:$0xf8]  ;;  %v1335_v9 = vld [vmem:[#allocation3 + $0x18] sm:$0xf] }
 0x1a2   :  { %v1337_v10 = vld [vmem:[#allocation3 + $0x10] sm:$0xf0]  ;;  %v1360_v11 = vshll.u32 %v1332_v8, 16  ;;  %v1365_v14 = vshll.u32 %v1335_v9, 16  ;;  %v3552_v15 = vld [vmem:[#allocation3 + $0x18] sm:$0x1f] }
 0x1a3   :  { %v1400_v16 = vshrl.u32 %v1337_v10, 16  ;;  %v1403_v18 = vshll.u32 %v1337_v10, 16  ;;  %v1408_v19 = vshrl.u32 %v3552_v15, 16  ;;  %v1411_v20 = vshll.u32 %v3552_v15, 16  ;;  %v1333_v30 = vld [vmem:[#allocation3 + $0x18] sm:$0x7]  ;;  %2921 = vmatpush3.bf16.msra.mxu1 %v3150_v4 }
 0x1a4   :  { %2970 = vmatpush3.bf16.msra.mxu0 %v3138_v3  ;;  %v1358_v21 = vshrl.u32 %v1332_v8, 16  ;;  %v1362_v22 = vrot.slane %v1360_v11, 1  ;;  %v1367_v23 = vrot.slane %v1365_v14, 1  ;;  %v1369_v24 = vshrl.u32 %v1335_v9, 16  ;;  %v1341_v51 = vld [vmem:[#allocation3 + $0x10] sm:$0xe0]  ;;  %2922 = vmatprep.subr.bf16.mxu1 %v3151_v5 }
 0x1a5   :  { %2971 = vmatprep.subr.bf16.mxu0 %v3139_v7  ;;  %v1402_v26 = vrot.slane %v1400_v16, 1  ;;  %v1405_v27 = vrot.slane %v1403_v18, 2  ;;  %v1410_v28 = vrot.slane %v1408_v19, 1  ;;  %v1413_v29 = vrot.slane %v1411_v20, 2  ;;  %v3149_v3 = vld [vmem:[#allocation10 + $0x90] sm:$0xff]   ;;  %v3156_v11 = vld [vmem:[#allocation10 + $0x18] sm:$0xff]  }
 0x1a6   :  { %v1363_v31 = vor.u32 %v1362_v22, %v1358_v21  ;;  %v1371_v62 = vor.u32 %v1369_v24, %v1367_v23  ;;  %v1379_v32 = vrot.slane %v1337_v10, 1  ;;  %v1380_v13 = vrot.slane %v1335_v9, 1  ;;  %v3154_v9 = vld [vmem:[#allocation10 + $0x58] sm:$0xff]   ;;  %v3155_v10 = vld [vmem:[#allocation10 + $0xa0] sm:$0xff]   ;;  %v3160_v16 = vld [vmem:[#allocation10 + $0x68] sm:$0xff]  }
 0x1a7   :  { %v1406_v34 = vor.u32 %v1405_v27, %v1402_v26  ;;  %v1414_v6 = vor.u32 %v1413_v29, %v1410_v28  ;;  %v1445_v39 = vrot.slane %v1332_v8, 3  ;;  %v1446_v40 = vrot.slane %v1333_v30, 3  ;;  %v3153_v8 = vld [vmem:[#allocation10 + $0x10] sm:$0xff]   ;;  %v3157_v14 = vld [vmem:[#allocation10 + $0x60] sm:$0xff]   ;;  %v3162_v19 = vld [vmem:[#allocation10 + $0x28] sm:$0xff]  }
 0x1a8   :  { %2972 = vmatpush3.bf16.msra.mxu0 %v3139_v7  ;;  %v1368_v36 = vsel %vm152_vm0, %v1363_v31, %v1367_v23  ;;  %v1449_v37 = vrot.slane %v1371_v62, 3  ;;  %v1381_v45 = vsel %vm187_vm3, %v1379_v32, %v1380_v13  ;;  %v1452_v48 = vrot.slane %v1380_v13, 3  ;;  %v3152_v7 = vld [vmem:[#allocation10 + $0x98] sm:$0xff]   ;;  %2923 = vmatpush3.bf16.msra.mxu1 %v3153_v8  ;;  %v3161_v18 = vld [vmem:[#allocation10 + $0xb0] sm:$0xff]  }
 0x1a9   :  { %2973 = vmatprep.subr.bf16.mxu0 %v3140_v25  ;;  %v1448_v42 = vrot.slane %v1368_v36, 3  ;;  %v1415_v43 = vsel %vm194_vm1, %v1406_v34, %v1414_v6  ;;  %v1455_v44 = vrot.slane %v1414_v6, 3  ;;  %v1451_v47 = vrot.slane %v1381_v45, 3  ;;  %2924 = vmatprep.subr.bf16.mxu1 %v3154_v9  ;;  %v3163_v20 = vld [vmem:[#allocation10 + $0x70] sm:$0xff]   ;;  %v3164_v21 = vld [vmem:[#allocation10 + $0xb8] sm:$0xff]  }
 0x1aa   :  { %v1454_v46 = vrot.slane %v1415_v43, 3  ;;  %v1447_v53 = vsel %vm279_vm6, %v1445_v39, %v1446_v40  ;;  %v1423_v56 = vrot.slane %v1341_v51, 2  ;;  %v1424_v57 = vrot.slane %v3552_v15, 2  ;;  %v3158_v15 = vld [vmem:[#allocation10 + $0xa8] sm:$0xff]   ;;  %v3165_v22 = vld [vmem:[#allocation10 + $0x30] sm:$0xff]   ;;  %v3166_v23 = vld [vmem:[#allocation10 + $0x78] sm:$0xff]  }
 0x1ab   :  { %v1450_v50 = vsel %vm279_vm6, %v1448_v42, %v1449_v37  ;;  %v1453_v54 = vsel %vm279_vm6, %v1451_v47, %v1452_v48  ;;  %v3167_v24 = vld [vmem:[#allocation10 + $0x38] sm:$0xff]   ;;  %v2665_v26 = vld [vmem:[%s3608_s4] ss:$0 sm:$0xff] }
 0x1ac   :  { %2974 = vmatpush3.bf16.msra.mxu0 %v3140_v25  ;;  %1837 = vmatprep.mubr.bf16.mxu0 %v1450_v50  ;;  %v1456_v52 = vsel %vm279_vm6, %v1454_v46, %v1455_v44  ;;  %v1425_v59 = vsel %vm233_vm4, %v1423_v56, %v1424_v57  ;;  %v1458_v61 = vrot.slane %v1424_v57, 3 }
 0x1ad   :  { %2975 = vmatprep.subr.bf16.mxu0 %v3141_v41  ;;  %1886 = vmatprep.mubr.bf16.mxu1 %v1456_v52  ;;  %v1457_v60 = vrot.slane %v1425_v59, 3 }
 0x1ae   :  { %1838 = vmatmul.mubr.bf16.gmra.mrb[20].mxu0 %v1447_v53  ;;  %1887 = vmatmul.mubr.bf16.gmra.mrb[20].mxu1 %v1453_v54 }
 0x1af   :  { %2981 = vmatprep.mubr.bf16.mxu0 %v1444_v55  ;;  %v1459_v12 = vsel %vm279_vm6, %v1457_v60, %v1458_v61  ;;  %2925 = vmatpush3.bf16.msra.mxu1 %v3156_v11 }
 0x1b0   :  { %2976 = vmatpush3.bf16.msra.mxu0 %v3141_v41  ;;  %2926 = vmatprep.subr.bf16.mxu1 %v3157_v14 }
 0x1b1   :  { %2977 = vmatprep.subr.bf16.mxu0 %v3142_v49 }
 0x1b3   :  { %2927 = vmatpush3.bf16.msra.mxu1 %v3159_v17 }
 0x1b4   :  { %2978 = vmatpush3.bf16.msra.mxu0 %v3142_v49  ;;  %2928 = vmatprep.subr.bf16.mxu1 %v3160_v16 }
 0x1b5   :  { %2979 = vmatprep.subr.bf16.mxu0 %v3143_v58 }
 0x1b7   :  { %2929 = vmatpush3.bf16.msra.mxu1 %v3162_v19 }
 0x1b8   :  { %2980 = vmatpush3.bf16.msra.mxu0 %v3143_v58  ;;  %2930 = vmatprep.subr.bf16.mxu1 %v3163_v20 }
 0x1b9   :  { %2985 = vmatprep.subr.bf16.mxu0 %v3144_v63 }
 0x1bb   :  { %2982 = vmatmul.mubr.bf16.vlgmr.msra.gmra.mrb[24].mxu0 %v1459_v12  ;;  %2931 = vmatpush3.bf16.msra.mxu1 %v3165_v22 }
 0x1bc   :  { %2986 = vmatpush3.bf16.msra.mxu0 %v3144_v63  ;;  %2932 = vmatprep.subr.bf16.mxu1 %v3166_v23 }
 0x1bd   :  { %2987 = vmatprep.subr.bf16.mxu0 %v3146_v1 }
 0x1bf   :  { %2933 = vmatpush3.bf16.msra.mxu1 %v3167_v24 }
 0x1c0   :  { %2988 = vmatpush3.bf16.msra.mxu0 %v3146_v1 }
 0x1c1   :  { %2989 = vmatprep.subr.bf16.mxu0 %v3149_v3 }
 0x1c4   :  { %2990 = vmatpush3.bf16.msra.mxu0 %v3149_v3 }
 0x1c5   :  { %2991 = vmatprep.subr.bf16.mxu0 %v3152_v7 }
 0x1c8   :  { %2992 = vmatpush3.bf16.msra.mxu0 %v3152_v7 }
 0x1c9   :  { %2993 = vmatprep.subr.bf16.mxu0 %v3155_v10 }
 0x1cc   :  { %2994 = vmatpush3.bf16.msra.mxu0 %v3155_v10 }
 0x1cd   :  { %2995 = vmatprep.subr.bf16.mxu0 %v3158_v15 }
 0x1d0   :  { %2996 = vmatpush3.bf16.msra.mxu0 %v3158_v15 }
 0x1d1   :  { %2997 = vmatprep.subr.bf16.mxu0 %v3161_v18 }
 0x1d4   :  { %2998 = vmatpush3.bf16.msra.mxu0 %v3161_v18 }
 0x1d5   :  { %2999 = vmatprep.subr.bf16.mxu0 %v3164_v21 }
 0x1d8   :  { %3000 = vmatpush3.bf16.msra.mxu0 %v3164_v21 }
 0x26e   :  { %v2868_v25 = vpop.f32.mrb[16].mxu0 }
 0x26f   :  { %v2869_v27 = vpop.f32.mrb[17].mxu0 }
 0x270   :  { %v2870_v28 = vadd.f32 %v2869_v27, %v2868_v25  ;;  %v2871_v29 = vpop.f32.mrb[18].mxu0 }
 0x271   :  { %v2896_v30 = vpop.f32.mrb[16].mxu1  ;;  %v2872_v31 = vpop.f32.mrb[19].mxu0 }
 0x272   :  { %v1832_v62 = vadd.f32 %v2870_v28, %v2665_v26  ;;  %v2897_v32 = vpop.f32.mrb[17].mxu1  ;;  %v2873_v33 = vadd.f32 %v2872_v31, %v2871_v29 }
 0x273   :  { %v2898_v34 = vadd.f32 %v2897_v32, %v2896_v30  ;;  %v2899_v6 = vpop.f32.mrb[18].mxu1 }
 0x274   :  { %v1835_v13 = vadd.f32 %v2873_v33, %v2665_v26  ;;  %v2900_v35 = vpop.f32.mrb[19].mxu1 }
 0x275   :  { %v2901_v36 = vadd.f32 %v2900_v35, %v2899_v6  ;;  %v1881_v37 = vadd.f32 %v2898_v34, %v1832_v62 }
 0x277   :  { %v1884_v39 = vadd.f32 %v2901_v36, %v1835_v13 }
 0x281   :  { %v2874_v40 = vpop.f32.mrb[20].mxu0  ;;  %v2902_v41 = vpop.f32.mrb[20].mxu1 }
 0x282   :  { %v2875_v42 = vpop.f32.mrb[21].mxu0  ;;  %v2903_v44 = vpop.f32.mrb[21].mxu1 }
 0x283   :  { %v2876_v43 = vadd.f32 %v2875_v42, %v2874_v40  ;;  %v2877_v45 = vpop.f32.mrb[22].mxu0  ;;  %v2904_v46 = vadd.f32 %v2903_v44, %v2902_v41  ;;  %v2905_v47 = vpop.f32.mrb[22].mxu1 }
 0x284   :  { %v2878_v48 = vpop.f32.mrb[23].mxu0  ;;  %v2906_v52 = vpop.f32.mrb[23].mxu1 }
 0x285   :  { %v1840_v50 = vadd.f32 %v2876_v43, %v2665_v26  ;;  %v2879_v51 = vadd.f32 %v2878_v48, %v2877_v45  ;;  %v2907_v53 = vadd.f32 %v2906_v52, %v2905_v47 }
 0x287   :  { %v1843_v49 = vadd.f32 %v2879_v51, %v2665_v26  ;;  %v1889_v54 = vadd.f32 %v2904_v46, %v1840_v50 }
 0x289   :  { %v1892_v55 = vadd.f32 %v2907_v53, %v1843_v49 }
 0x28e   :  { %v2983_v56 = vpop.f32.mrb[24].mxu0 }
 0x28f   :  { %v1938_v57 = vadd.f32 %v2983_v56, %v1889_v54  ;;  %v1929_v58 = vpop.f32.mrb[25].mxu0 }
 0x290   :  { %v1930_v59 = vadd.f32 %v1929_v58, %v1881_v37  ;;  %v2984_v60 = vpop.f32.mrb[26].mxu0 }
 0x291   :  { %v1941_v61 = vadd.f32 %v2984_v60, %v1892_v55  ;;  %v1932_v12 = vpop.f32.mrb[27].mxu0  ;;  %v1946_v0 = vmax.f32 %v1938_v57, 0.0 }
 0x292   :  { %v1933_v63 = vadd.f32 %v1932_v12, %v1884_v39  ;;  %v1944_v38 = vmax.f32 %v1930_v59, 0.0 }
 0x293   :  { %v1947_v1 = vmax.f32 %v1941_v61, 0.0 }
 0x294   :  { %v1945_v2 = vmax.f32 %v1933_v63, 0.0 }
 0x295   :  { %v1949_v3 = vpack.c.bf16 %v1947_v1, %v1946_v0 }
 0x296   :  { %v1948_v4 = vpack.c.bf16 %v1945_v2, %v1944_v38 }
 0x297   :  { %v1953_v5 = vrot.slane %v1949_v3, 4 }
 0x298   :  { %v1952_v7 = vrot.slane %v1948_v4, 4 }
 0x299   :  { %1958 = vst [vmem:[#allocation2 + $0x18] ss:$-4 sps:$4 sm:$0xff] %v1953_v5  }
 0x29a   :  { %1956 = vst [vmem:[#allocation2 + $0x8] ss:$-4 sps:$4 sm:$0xff] %v1952_v7  }
 0x2a0   :  { %v3571_v8 = vld [vmem:[#allocation2 + $0x10] sm:$0xf0]  ;;  %v1967_v9 = vld [vmem:[#allocation2 + $0x18] sm:$0x1f] }
 0x2a1   :  { %v1964_v10 = vld [vmem:[#allocation2] sm:$0xf0]  ;;  %v1966_v11 = vld [vmem:[#allocation2 + $0x8] sm:$0x1f]  ;;  %v2005_v14 = vrot.slane %v3571_v8, 1  ;;  %v2006_v15 = vrot.slane %v1967_v9, 1 }
 0x2a2   :  { %v2002_v17 = vrot.slane %v1964_v10, 1  ;;  %v2003_v16 = vrot.slane %v1966_v11, 1  ;;  %v1961_v18 = vld [vmem:[#allocation2 + $0x8] sm:$0xf]  ;;  %v1969_v19 = vshrl.u32 %v1964_v10, 16  ;;  %v1971_v20 = vshll.u32 %v1964_v10, 16 }
 0x2a3   :  { %v2007_v21 = vsel %vm187_vm3, %v2005_v14, %v2006_v15  ;;  %v2092_v22 = vshrl.u32 %v2006_v15, 16  ;;  %v2095_v23 = vshll.u32 %v2006_v15, 16  ;;  %v1976_v24 = vshll.u32 %v1961_v18, 16  ;;  %v1960_v13 = vld [vmem:[#allocation2] sm:$0xf8] }
 0x2a4   :  { %v2004_v25 = vsel %vm187_vm3, %v2002_v17, %v2003_v16  ;;  %v2046_v26 = vshrl.u32 %v2003_v16, 16  ;;  %v2049_v27 = vshll.u32 %v2003_v16, 16  ;;  %v2084_v28 = vshrl.u32 %v2007_v21, 16  ;;  %v1963_v60 = vld [vmem:[#allocation2 + $0x18] sm:$0xf] }
 0x2a5   :  { %v2038_v29 = vshrl.u32 %v2004_v25, 16  ;;  %v2041_v30 = vshll.u32 %v2004_v25, 16  ;;  %v2087_v31 = vshll.u32 %v2007_v21, 16  ;;  %v2094_v62 = vrot.slane %v2092_v22, 3  ;;  %v1962_v1 = vld [vmem:[#allocation2 + $0x10] sm:$0xf8] }
 0x2a6   :  { %v2048_v32 = vrot.slane %v2046_v26, 3  ;;  %v2051_v33 = vrot.slane %v2049_v27, 4  ;;  %v2086_v34 = vrot.slane %v2084_v28, 3  ;;  %v2097_v6 = vrot.slane %v2095_v23, 4 }
 0x2a7   :  { %v2040_v35 = vrot.slane %v2038_v29, 3  ;;  %v2043_v36 = vrot.slane %v2041_v30, 4  ;;  %v2089_v37 = vrot.slane %v2087_v31, 4  ;;  %v1973_v39 = vrot.slane %v1971_v20, 1 }
 0x2a8   :  { %v2052_v40 = vor.u32 %v2051_v33, %v2048_v32  ;;  %v2098_v41 = vor.u32 %v2097_v6, %v2094_v62  ;;  %v1978_v42 = vrot.slane %v1976_v24, 1  ;;  %v1980_v43 = vshrl.u32 %v1961_v18, 16 }
 0x2a9   :  { %v2044_v44 = vor.u32 %v2043_v36, %v2040_v35  ;;  %v2090_v45 = vor.u32 %v2089_v37, %v2086_v34  ;;  %v1974_v46 = vor.u32 %v1973_v39, %v1969_v19  ;;  %v2009_v47 = vshrl.u32 %v1960_v13, 16  ;;  %v3168_v37 = vld [vmem:[#allocation12] sm:$0xff]  }
 0x2aa   :  { %v1982_v48 = vor.u32 %v1980_v43, %v1978_v42  ;;  %v2012_v50 = vshll.u32 %v1960_v13, 16  ;;  %v2016_v51 = vrot.slane %v1980_v43, 3  ;;  %v2017_v52 = vrot.slane %v1976_v24, 4  ;;  %v3172_v43 = vld [vmem:[#allocation12 + $0x20] sm:$0xff]  }
 0x2ab   :  { %v2053_v53 = vsel %vm286_vm5, %v2044_v44, %v2052_v40  ;;  %v2099_v49 = vsel %vm286_vm5, %v2090_v45, %v2098_v41  ;;  %v1979_v54 = vsel %vm152_vm0, %v1974_v46, %v1978_v42  ;;  %v2011_v55 = vrot.slane %v2009_v47, 3  ;;  %v3169_v40 = vld [vmem:[#allocation12 + $0x8] sm:$0xff]   ;;  %v3170_v41 = vld [vmem:[#allocation12 + $0x10] sm:$0xff]   ;;  %v3171_v42 = vld [vmem:[#allocation12 + $0x18] sm:$0xff]  }
 0x2ac   :  { %3001 = vmatprep.mubr.bf16.mxu0 %v2053_v53  ;;  %v2021_v56 = vshrl.u32 %v1979_v54, 16  ;;  %v2024_v57 = vshll.u32 %v1979_v54, 16  ;;  %v2029_v58 = vshrl.u32 %v1982_v48, 16  ;;  %v2032_v59 = vshll.u32 %v1982_v48, 16  ;;  %v3173_v44 = vld [vmem:[#allocation12 + $0x28] sm:$0xff]   ;;  %v3174_v45 = vld [vmem:[#allocation12 + $0x30] sm:$0xff]  }
 0x2ad   :  { %3002 = vmatmul.mubr.bf16.vlgmr.msra.gmra.mrb[28].mxu0 %v2099_v49  ;;  %v2014_v61 = vrot.slane %v2012_v50, 4  ;;  %v2018_v12 = vor.u32 %v2017_v52, %v2016_v51  ;;  %v1984_v63 = vshrl.u32 %v3571_v8, 16  ;;  %v1986_v0 = vshll.u32 %v3571_v8, 16  ;;  %v3175_v46 = vld [vmem:[#allocation12 + $0x38] sm:$0xff]   ;;  %v2706_v53 = vld [vmem:[%s3610_s6] ss:$0 sm:$0xff] }
 0x2ae   :  { %v2023_v38 = vrot.slane %v2021_v56, 3  ;;  %v2026_v2 = vrot.slane %v2024_v57, 4  ;;  %v2031_v3 = vrot.slane %v2029_v58, 3  ;;  %v2034_v4 = vrot.slane %v2032_v59, 4 }
 0x2af   :  { %v2015_v5 = vor.u32 %v2014_v61, %v2011_v55  ;;  %v1988_v7 = vrot.slane %v1986_v0, 1  ;;  %v1991_v9 = vshll.u32 %v1963_v60, 16  ;;  %v1995_v10 = vshrl.u32 %v1963_v60, 16 }
 0x2b0   :  { %v2027_v11 = vor.u32 %v2026_v2, %v2023_v38  ;;  %v2035_v14 = vor.u32 %v2034_v4, %v2031_v3  ;;  %v2055_v15 = vshrl.u32 %v1962_v1, 16  ;;  %v2058_v17 = vshll.u32 %v1962_v1, 16 }
 0x2b1   :  { %v1989_v16 = vor.u32 %v1988_v7, %v1984_v63  ;;  %v1993_v18 = vrot.slane %v1991_v9, 1  ;;  %v2019_v20 = vsel %vm286_vm5, %v2015_v5, %v2018_v12  ;;  %v2062_v23 = vrot.slane %v1995_v10, 3 }
 0x2b2   :  { %v2036_v19 = vsel %vm286_vm5, %v2027_v11, %v2035_v14  ;;  %v2057_v22 = vrot.slane %v2055_v15, 3  ;;  %v2060_v26 = vrot.slane %v2058_v17, 4  ;;  %v2063_v27 = vrot.slane %v1991_v9, 4 }
 0x2b3   :  { %2337 = vmatprep.mubr.bf16.mxu1 %v2036_v19  ;;  %v1994_v8 = vsel %vm152_vm0, %v1989_v16, %v1993_v18  ;;  %v1997_v21 = vor.u32 %v1995_v10, %v1993_v18  ;;  %v3324_v39 = vmov 0.0  }
 0x2b4   :  { %2338 = vmatmul.mubr.bf16.vlgmr.msra.gmra.mrb[24].mxu1 %v2019_v20  ;;  %v2067_v24 = vshrl.u32 %v1994_v8, 16  ;;  %v2070_v25 = vshll.u32 %v1994_v8, 16  ;;  %v2061_v34 = vor.u32 %v2060_v26, %v2057_v22  ;;  %v2064_v6 = vor.u32 %v2063_v27, %v2062_v23  ;;  %3005 = vmatprep.subr.bf16.mxu1 %v3324_v39 }
 0x2b5   :  { %v2075_v28 = vshrl.u32 %v1997_v21, 16  ;;  %v2078_v29 = vshll.u32 %v1997_v21, 16  ;;  %3006 = vmatpush3.bf16.msra.mxu1 %v3168_v37 }
 0x2b6   :  { %v2069_v30 = vrot.slane %v2067_v24, 3  ;;  %v2072_v31 = vrot.slane %v2070_v25, 4  ;;  %v2065_v36 = vsel %vm286_vm5, %v2061_v34, %v2064_v6  ;;  %3007 = vmatprep.subr.bf16.mxu1 %v3324_v39 }
 0x2b7   :  { %v2077_v62 = vrot.slane %v2075_v28, 3  ;;  %v2080_v32 = vrot.slane %v2078_v29, 4 }
 0x2b8   :  { %v2073_v33 = vor.u32 %v2072_v31, %v2069_v30 }
 0x2b9   :  { %v2081_v13 = vor.u32 %v2080_v32, %v2077_v62  ;;  %3008 = vmatpush3.bf16.msra.mxu1 %v3169_v40 }
 0x2ba   :  { %3009 = vmatprep.subr.bf16.mxu1 %v3324_v39 }
 0x2bb   :  { %v2082_v35 = vsel %vm286_vm5, %v2073_v33, %v2081_v13 }
 0x2bc   :  { %2345 = vmatprep.mubr.bf16.mxu1 %v2082_v35 }
 0x2bd   :  { %2346 = vmatmul.mubr.bf16.gmra.mrb[28].mxu1 %v2065_v36 }
 0x2be   :  { %3021 = vmatprep.mubr.msk.bf16.mxu1 %vm3325_vm7, %v3324_v39  ;;  %3010 = vmatpush3.bf16.msra.mxu1 %v3170_v41 }
 0x2bf   :  { %3011 = vmatprep.subr.bf16.mxu1 %v3324_v39 }
 0x2c2   :  { %3012 = vmatpush3.bf16.msra.mxu1 %v3171_v42 }
 0x2c3   :  { %3013 = vmatprep.subr.bf16.mxu1 %v3324_v39 }
 0x2c6   :  { %3014 = vmatpush3.bf16.msra.mxu1 %v3172_v43 }
 0x2c7   :  { %3015 = vmatprep.subr.bf16.mxu1 %v3324_v39 }
 0x2ca   :  { %3016 = vmatpush3.bf16.msra.mxu1 %v3173_v44 }
 0x2cb   :  { %3017 = vmatprep.subr.bf16.mxu1 %v3324_v39 }
 0x2ce   :  { %3018 = vmatpush3.bf16.msra.mxu1 %v3174_v45 }
 0x2cf   :  { %3019 = vmatprep.subr.bf16.mxu1 %v3324_v39 }
 0x2d2   :  { %3020 = vmatpush3.bf16.msra.mxu1 %v3175_v46 }
 0x380   :  { %v3003_v47 = vpop.f32.mrb[28].mxu0 }
 0x381   :  { %v2388_v48 = vpop.f32.mrb[29].mxu0 }
 0x382   :  { %v3004_v50 = vpop.f32.mrb[30].mxu0 }
 0x383   :  { %v2391_v51 = vpop.f32.mrb[31].mxu0 }
 0x387   :  { %v2934_v52 = vpop.f32.mrb[24].mxu1 }
 0x388   :  { %v2935_v49 = vpop.f32.mrb[25].mxu1 }
 0x389   :  { %v2936_v54 = vadd.f32 %v2935_v49, %v2934_v52  ;;  %v2937_v55 = vpop.f32.mrb[26].mxu1 }
 0x38a   :  { %v2938_v56 = vpop.f32.mrb[27].mxu1 }
 0x38b   :  { %v2340_v57 = vadd.f32 %v2936_v54, %v2706_v53  ;;  %v2939_v58 = vadd.f32 %v2938_v56, %v2937_v55 }
 0x38d   :  { %v2389_v59 = vadd.f32 %v2388_v48, %v2340_v57  ;;  %v2343_v60 = vadd.f32 %v2939_v58, %v2706_v53 }
 0x38f   :  { %v2392_v61 = vadd.f32 %v2391_v51, %v2343_v60  ;;  %v2403_v63 = vmax.f32 %v2389_v59, 0.0 }
 0x390   :  { %v2940_v12 = vpop.f32.mrb[28].mxu1 }
 0x391   :  { %v2404_v0 = vmax.f32 %v2392_v61, 0.0  ;;  %v2941_v1 = vpop.f32.mrb[29].mxu1 }
 0x392   :  { %v2942_v38 = vadd.f32 %v2941_v1, %v2940_v12  ;;  %v2943_v2 = vpop.f32.mrb[30].mxu1 }
 0x393   :  { %v2407_v3 = vpack.c.bf16 %v2404_v0, %v2403_v63  ;;  %v2944_v4 = vpop.f32.mrb[31].mxu1 }
 0x394   :  { %v2348_v5 = vadd.f32 %v2942_v38, %v2706_v53  ;;  %v2945_v7 = vadd.f32 %v2944_v4, %v2943_v2 }
 0x395   :  { %v2411_v9 = vrot.slane %v2407_v3, 4 }
 0x396   :  { %v2397_v10 = vadd.f32 %v3003_v47, %v2348_v5  ;;  %v2351_v11 = vadd.f32 %v2945_v7, %v2706_v53  ;;  %v2731_v53 = vld [vmem:[%s3612_s8] ss:$0 sm:$0xff] }
 0x397   :  { %2415 = vst [vmem:[#allocation3 + $0x8] ss:$-4 sps:$4 sm:$0xff] %v2411_v9  }
 0x398   :  { %v2400_v14 = vadd.f32 %v3004_v50, %v2351_v11  ;;  %v2405_v15 = vmax.f32 %v2397_v10, 0.0 }
 0x39a   :  { %v2406_v17 = vmax.f32 %v2400_v14, 0.0 }
 0x39c   :  { %v2408_v16 = vpack.c.bf16 %v2406_v17, %v2405_v15 }
 0x39e   :  { %v2412_v18 = vrot.slane %v2408_v16, 4  ;;  %v2419_v19 = vld [vmem:[#allocation3] sm:$0xf0]  ;;  %v2420_v20 = vld [vmem:[#allocation3 + $0x8] sm:$0xf] }
 0x39f   :  { %v2428_v8 = vrot.slane %v2419_v19, 4  ;;  %v2429_v21 = vrot.slane %v2420_v20, 4 }
 0x3a0   :  { %2417 = vst [vmem:[#allocation3 + $0x18] ss:$-4 sps:$4 sm:$0xff] %v2412_v18  }
 0x3a1   :  { %v2430_v22 = vsel %vm2427_vm8, %v2428_v8, %v2429_v21 }
 0x3a2   :  { %v2436_v23 = vunpack.c.l.bf16 %v2430_v22  ;;  %v2437_v24 = vunpack.c.h.bf16 %v2430_v22 }
 0x3a4   :  { %v2440_v25 = vadd.f32 %v2437_v24, %v2436_v23 }
 0x3a6   :  { %v2441_v26 = vrot.slane %v2440_v25, 4 }
 0x3a7   :  { %v2421_v27 = vld [vmem:[#allocation3 + $0x10] sm:$0xf0]  ;;  %v2422_v28 = vld [vmem:[#allocation3 + $0x18] sm:$0xf] }
 0x3a8   :  { %v2431_v29 = vrot.slane %v2421_v27, 4  ;;  %v2432_v30 = vrot.slane %v2422_v28, 4  ;;  %v2442_v31 = vadd.f32 %v2441_v26, %v2440_v25 }
 0x3aa   :  { %v2433_v62 = vsel %vm2427_vm8, %v2431_v29, %v2432_v30  ;;  %v2443_v32 = vrot.slane %v2442_v31, 2 }
 0x3ab   :  { %v2438_v33 = vunpack.c.l.bf16 %v2433_v62  ;;  %v2439_v34 = vunpack.c.h.bf16 %v2433_v62 }
 0x3ac   :  { %v2444_v6 = vadd.f32 %v2443_v32, %v2442_v31 }
 0x3ad   :  { %v2447_v13 = vadd.f32 %v2439_v34, %v2438_v33 }
 0x3ae   :  { %v2445_v35 = vrot.slane %v2444_v6, 1 }
 0x3af   :  { %v2448_v36 = vrot.slane %v2447_v13, 4 }
 0x3b0   :  { %v2446_v39 = vadd.f32 %v2445_v35, %v2444_v6 }
 0x3b1   :  { %v2449_v37 = vadd.f32 %v2448_v36, %v2447_v13 }
 0x3b2   :  { %v2455_v43 = vmul.f32 0.0625, %v2446_v39 }
 0x3b3   :  { %v2450_v40 = vrot.slane %v2449_v37, 2 }
 0x3b4   :  { %v2457_v46 = vpack.c.bf16 %v2455_v43, %v2455_v43 }
 0x3b5   :  { %v2451_v41 = vadd.f32 %v2450_v40, %v2449_v37 }
 0x3b6   :  { %v2484_v48 = vunpack.c.l.b16 %v2457_v46 }
 0x3b7   :  { %v2452_v42 = vrot.slane %v2451_v41, 1 }
 0x3b9   :  { %v2453_v44 = vadd.f32 %v2452_v42, %v2451_v41 }
 0x3bb   :  { %v2456_v45 = vmul.f32 0.0625, %v2453_v44 }
 0x3bd   :  { %v2458_v47 = vpack.c.bf16 %v2456_v45, %v2456_v45 }
 0x3bf   :  { %v2485_v50 = vunpack.c.l.b16 %v2458_v47 }
 0x3c1   :  { %v2487_v51 = vsel %vm2486_vm9, %v2485_v50, %v2484_v48 }
 0x3c2   :  { %v2488_v52 = vpack.c.b16 %v2487_v51, %v2487_v51 }
 0x3c4   :  { %3022 = vmatmul.mubr.bf16.vlgmr.msra.gmra.mrb[32].mxu1 %v2488_v52 }
 0x497   :  { %v2572_v49 = vpop.f32.mrb[32].mxu1 }
 0x498   :  { %v2573_v54 = vadd.f32 %v2731_v53, %v2572_v49  ;;  %v3023_v55 = vpop.f32.mrb[33].mxu1 }
 0x499   :  { %v2575_v56 = vpop.f32.mrb[34].mxu1 }
 0x49a   :  { %2578 = vst [vmem:[#allocation13] sm:$0x3] %v2573_v54  ;;  %v3024_v57 = vpop.f32.mrb[35].mxu1 }
 0x49b   :  { %3297 = shalt.err (!%p3294_p2)
}
 0x49c   :  { %s3298_s8 = scalar_lea.hbm %s3613_s9, 32 }
 0x49d   :  { %p3299_p3 = scmp.ne.s32.totalorder %s3613_s9, %s3298_s8  ;;  %p3302_p4 = scmp.lt.u32.totalorder %s3298_s8, %s3613_s9 }
 0x49f   :  { %p3304_p5 = pnand %p3302_p4, %p3299_p3 }
 0x4a1   :  { %3307 = shalt.err (!%p3304_p5)
}
 0x4a2   :  { %2588 = dma.vmem_to_hbm [thread:$0]  %s2586_s30, 32, %s3613_s9, [#allocation6]  }
 0x4a3   :  { %3314 = dma.done.wait [#allocation6], 32  }
 0x4a4   :  { %3315 = vsyncadd [#allocation6], 4294967264 }
 0x4a5   :  { %2592 = vsyncpa [#allocation5], 1 }
 0x4a6   :  { %2593 = vsyncpa [#allocation8], 1 }
 0x4a7   :  { %2594 = vsyncpa [#allocation11], 1 }
 0x4a8   :  { %2595 = vsyncpa [#allocation6], 1 }

</bundles_post_ra>
